<compile_context>
chip_gen: v5e
topology: v5e:2x2
jax: 0.10.0
libtpu: 0.0.40
codegen_flags: <defaults>
</compile_context>

<pallas_src>
import functools

import jax
import jax.numpy as jnp
from jax.experimental import pallas as pl
from jax.experimental.pallas import tpu as pltpu


# ---------------------------------------------------------------------------
# Kernel
# ---------------------------------------------------------------------------
def _rk4n_kernel(*refs, num_hidden_layers):
    if num_hidden_layers > 1:
        (x_ref, p_ref, wx_ref, wp_ref, bin_ref,
         wh_ref, bh_ref, wo_ref, bo_ref, o_ref) = refs
    else:
        (x_ref, p_ref, wx_ref, wp_ref, bin_ref,
         wo_ref, bo_ref, o_ref) = refs
        wh_ref = bh_ref = None

    x = x_ref[...]                       # (tb, Dp) f32
    cdt = wx_ref.dtype                   # bf16 (or f32) MXU operand dtype

    # p-contribution + input bias is identical in all 4 RK stages -> hoist it.
    p_contrib = jnp.dot(p_ref[...].astype(cdt), wp_ref[...],
                        preferred_element_type=jnp.float32) + bin_ref[...]

    def relu_c(f):
        # Cast first, then ReLU: identical values to max-then-cast (max with 0)
        # but the VPU works on packed bf16 vregs on v6e/v7x.
        return jnp.maximum(f.astype(cdt), 0.0)

    def one_step(xm):
        # Input layer: Linear(input_size + num_param -> hidden); the concat is
        # replaced by the W_x / W_p split (p part hoisted above).
        f = jnp.dot(xm.astype(cdt), wx_ref[...],
                    preferred_element_type=jnp.float32) + p_contrib
        # Hidden layers.
        for l in range(num_hidden_layers - 1):
            f = jnp.dot(relu_c(f), wh_ref[l],
                        preferred_element_type=jnp.float32) + bh_ref[l]
        # Output layer (h already folded into wo/bo in the wrapper).
        f = jnp.dot(relu_c(f), wo_ref[...],
                    preferred_element_type=jnp.float32) + bo_ref[...]
        return f

    # RK4 combination, accumulated incrementally (one k live at a time).
    k = one_step(x)                      # k1
    acc = x + k * (1.0 / 6.0)
    k = one_step(x + 0.5 * k)            # k2
    acc = acc + k * (1.0 / 3.0)
    k = one_step(x + 0.5 * k)            # k3
    acc = acc + k * (1.0 / 3.0)
    k = one_step(x + k)                  # k4
    o_ref[...] = (acc + k * (1.0 / 6.0)).astype(o_ref.dtype)


# ---------------------------------------------------------------------------
# Hardware-aware helpers
# ---------------------------------------------------------------------------
def _round_up(n, m):
    return ((n + m - 1) // m) * m


def _tpu_physical_vmem_bytes():
    try:
        info = pltpu.get_tpu_info()
        v = getattr(info, "vmem_capacity_bytes", None)
        if v:
            return int(v)
    except Exception:
        pass
    return 64 * 1024 * 1024   # conservative lower bound (v7x per-TC)


def _num_tensorcores():
    try:
        kind = jax.devices()[0].device_kind.lower()
    except Exception:
        return 1
    return 2 if any(t in kind for t in ("v7", "v4", "v5p")) else 1


def _pick_batch_tile(B, *, per_row_bytes, tile_budget_bytes, multiple, min_tiles):
    """Largest multiple-of-`multiple` divisor of B fitting the VMEM budget,
    preferring >= min_tiles grid steps (megacore), else any count."""
    if B % multiple != 0:
        return B
    cap = max(multiple, tile_budget_bytes // max(per_row_bytes, 1))

    def search(need_tiles):
        best = None
        tb = multiple
        while tb <= B:
            if B % tb == 0 and tb <= cap and (B // tb) >= need_tiles:
                best = tb
            tb += multiple
        return best

    best = search(min_tiles)
    if best is None:
        best = search(1)
    return best if best is not None else B


# ---------------------------------------------------------------------------
# Wrapper
# ---------------------------------------------------------------------------
def rk4n_forward(x, p, params, *, h=1.0, num_hidden_layers=2,
                 batch_tile=None, use_bf16=True, vmem_limit_bytes=None):
    """Pallas RK4N forward.  x: (B, input_size), p: (B, num_param)."""
    wx, wp, b_in, wh_stack, bh_stack, wo, bo = params
    B, D = x.shape
    P = p.shape[1]
    H = wx.shape[1]
    L = num_hidden_layers - 1                      # number of hidden->hidden layers

    # Lane-dense padding of every feature axis.
    Dp, Pp, Hp = _round_up(D, 128), _round_up(P, 128), _round_up(H, 128)

    wdt = jnp.bfloat16 if use_bf16 else jnp.float32
    w_item = jnp.dtype(wdt).itemsize
    out_item = jnp.dtype(x.dtype).itemsize

    def pad2(a, r, c):
        return jnp.pad(a, ((0, r - a.shape[0]), (0, c - a.shape[1])))

    # Pad weights once (HBM-side); fold h into the output layer; biases stay f32.
    wx_p = pad2(wx, Dp, Hp).astype(wdt)
    wp_p = pad2(wp, Pp, Hp).astype(wdt)
    bin_p = pad2(b_in, 1, Hp).astype(jnp.float32)
    wo_p = pad2(wo * h, Hp, Dp).astype(wdt)
    bo_p = pad2(bo * h, 1, Dp).astype(jnp.float32)
    if L > 0:
        wh_p = jnp.pad(wh_stack[:L],
                       ((0, 0), (0, Hp - H), (0, Hp - H))).astype(wdt)
        bh_p = jnp.pad(bh_stack[:L],
                       ((0, 0), (0, 0), (0, Hp - H))).astype(jnp.float32)
    else:
        wh_p = bh_p = None

    x_p = jnp.pad(x.astype(jnp.float32), ((0, 0), (0, Dp - D)))
    p_p = jnp.pad(p.astype(jnp.float32), ((0, 0), (0, Pp - P)))

    # --- VMEM accounting (weights single-buffered, x/p/out double-buffered) ---
    weight_bytes = ((wx_p.size + wp_p.size + wo_p.size) * w_item
                    + (bin_p.size + bo_p.size) * 4)
    if L > 0:
        weight_bytes += wh_p.size * w_item + bh_p.size * 4

    io_row_bytes = 2 * (Dp * 4 + Pp * 4 + Dp * out_item)     # 2x buffered x, p, out
    interm_row_bytes = (3 * Hp + 5 * Dp) * 4                  # f, p_contrib, k, acc, casts
    per_row_bytes = io_row_bytes + interm_row_bytes

    physical_vmem = _tpu_physical_vmem_bytes()
    headroom = 8 * 1024 * 1024
    tile_budget = max(int(0.7 * physical_vmem) - weight_bytes - headroom, 64 * 1024)

    cores = _num_tensorcores()
    multiple = 16 if use_bf16 else 8                          # bf16 LHS native sublane tile
    if batch_tile is None:
        tb = _pick_batch_tile(B, per_row_bytes=per_row_bytes,
                              tile_budget_bytes=tile_budget,
                              multiple=multiple, min_tiles=cores)
    else:
        tb = batch_tile
    assert B % tb == 0, "batch must be divisible by batch_tile"
    grid = (B // tb,)

    if vmem_limit_bytes is None:
        needed = weight_bytes + tb * per_row_bytes + headroom
        vmem_limit_bytes = min(max(needed, 32 * 1024 * 1024),
                               int(0.92 * physical_vmem))

    # --- BlockSpecs ---
    def const_spec(shape):
        imap = lambda i, _n=len(shape): (0,) * _n
        try:
            # Constant index_map -> a second pipeline buffer is pure waste.
            return pl.BlockSpec(shape, imap, pipeline_mode=pl.Buffered(1))
        except TypeError:               # older jax without pipeline_mode kwarg
            return pl.BlockSpec(shape, imap)

    in_specs = [
        pl.BlockSpec((tb, Dp), lambda i: (i, 0)),   # x  (batch-tiled)
        pl.BlockSpec((tb, Pp), lambda i: (i, 0)),   # p  (batch-tiled)
        const_spec((Dp, Hp)),                       # W_x
        const_spec((Pp, Hp)),                       # W_p
        const_spec((1, Hp)),                        # b_in
    ]
    operands = [x_p, p_p, wx_p, wp_p, bin_p]
    if L > 0:
        in_specs += [const_spec((L, Hp, Hp)),       # stacked hidden weights
                     const_spec((L, 1, Hp))]        # stacked hidden biases
        operands += [wh_p, bh_p]
    in_specs += [const_spec((Hp, Dp)),              # W_out (h folded in)
                 const_spec((1, Dp))]               # b_out (h folded in)
    operands += [wo_p, bo_p]

    grid_spec = pltpu.PrefetchScalarGridSpec(
        num_scalar_prefetch=0, grid=grid,
        in_specs=in_specs,
        out_specs=pl.BlockSpec((tb, Dp), lambda i: (i, 0)))

    # Advisory cost estimate (weights are fetched once, not once per grid step).
    per_row_flops = 2 * (Dp * Hp + L * Hp * Hp + Hp * Dp)
    flops = B * 4 * per_row_flops + B * 2 * Pp * Hp
    bytes_accessed = ((x_p.size + p_p.size) * 4 + weight_bytes + B * Dp * out_item)
    cost = pl.CostEstimate(flops=int(flops), transcendentals=0,
                           bytes_accessed=int(bytes_accessed))

    kernel = functools.partial(_rk4n_kernel, num_hidden_layers=num_hidden_layers)

    out_p = pl.pallas_call(
        kernel,
        out_shape=jax.ShapeDtypeStruct((B, Dp), x.dtype),
        grid_spec=grid_spec,
        compiler_params=pltpu.CompilerParams(
            dimension_semantics=("parallel",),
            vmem_limit_bytes=int(vmem_limit_bytes)),
        cost_estimate=cost,
    )(*operands)

    # Drop the lane padding outside the kernel.
    return out_p[:, :D]


# ---------------------------------------------------------------------------
# Params + reference
# ---------------------------------------------------------------------------
def init_params(key, input_size, num_param, hidden_size, num_hidden_layers):
    """PyTorch-Linear-style init (uniform(-1/sqrt(fan_in), 1/sqrt(fan_in)))."""
    def linear(k, fan_in, fan_out):
        kw, kb = jax.random.split(k)
        bound = float(1.0 / (fan_in ** 0.5))
        w = jax.random.uniform(kw, (fan_in, fan_out), jnp.float32, -bound, bound)
        b = jax.random.uniform(kb, (1, fan_out), jnp.float32, -bound, bound)
        return w, b

    L = num_hidden_layers - 1
    keys = jax.random.split(key, num_hidden_layers + 1)
    w_in, b_in = linear(keys[0], input_size + num_param, hidden_size)
    wx = w_in[:input_size]          # (D, H)
    wp = w_in[input_size:]          # (P, H)

    if L > 0:
        wh_list, bh_list = [], []
        for l in range(L):
            w, b = linear(keys[1 + l], hidden_size, hidden_size)
            wh_list.append(w)
            bh_list.append(b)
        wh_stack = jnp.stack(wh_list)               # (L, H, H)
        bh_stack = jnp.stack(bh_list)               # (L, 1, H)
    else:
        wh_stack = jnp.zeros((0, hidden_size, hidden_size), jnp.float32)
        bh_stack = jnp.zeros((0, 1, hidden_size), jnp.float32)

    wo, bo = linear(keys[-1], hidden_size, input_size)
    return wx, wp, b_in, wh_stack, bh_stack, wo, bo


def rk4n_reference(x, p, params, *, h=1.0, num_hidden_layers=2, use_bf16=False):
    """Pure-JAX reference mirroring the PyTorch forward (optionally with the
    same bf16-operand / f32-accumulate casting the kernel uses)."""
    wx, wp, b_in, wh_stack, bh_stack, wo, bo = params
    cdt = jnp.bfloat16 if use_bf16 else jnp.float32

    wx_c, wp_c, wh_c = wx.astype(cdt), wp.astype(cdt), wh_stack.astype(cdt)
    wo_c = (wo * h).astype(cdt)
    bo_c = bo * h

    def dot(a, b):
        return jnp.dot(a.astype(cdt), b, preferred_element_type=jnp.float32)

    p_contrib = dot(p, wp_c) + b_in

    def one_step(xm):
        f = dot(xm, wx_c) + p_contrib
        for l in range(num_hidden_layers - 1):
            f = dot(jnp.maximum(f.astype(cdt), 0.0), wh_c[l]) + bh_stack[l]
        return dot(jnp.maximum(f.astype(cdt), 0.0), wo_c) + bo_c

    k1 = one_step(x)
    k2 = one_step(x + 0.5 * k1)
    k3 = one_step(x + 0.5 * k2)
    k4 = one_step(x + k3)
    return x + (k1 + 2.0 * k2 + 2.0 * k3 + k4) / 6.0


# ---------------------------------------------------------------------------
# Demo
# ---------------------------------------------------------------------------
if __name__ == "__main__":
    # Module defaults: input_size=2, num_param=1, hidden_size=20, h=1, 2 hidden layers.
    input_size, num_param, hidden_size = 2, 1, 20
    num_hidden_layers, h = 2, 1.0
    batch = 64

    key = jax.random.PRNGKey(0)
    kx, kp, kw = jax.random.split(key, 3)
    x = jax.random.normal(kx, (batch, input_size), jnp.float32)
    p = jax.random.normal(kp, (batch, num_param), jnp.float32)
    params = init_params(kw, input_size, num_param, hidden_size, num_hidden_layers)

    out = rk4n_forward(x, p, params, h=h, num_hidden_layers=num_hidden_layers)
    out = jax.block_until_ready(out)
    assert out.shape == (batch, input_size)

    # Exact-precision check (reference uses the same bf16-operand / f32-acc math).
    ref_matched = rk4n_reference(x, p, params, h=h,
                                 num_hidden_layers=num_hidden_layers, use_bf16=True)
    assert jnp.allclose(out, ref_matched, atol=1e-4, rtol=1e-4), \
        "Pallas output mismatch vs matched-precision reference"

    # Sanity check vs the pure-f32 PyTorch-equivalent forward (loose: bf16 MXU).
    ref_f32 = rk4n_reference(x, p, params, h=h,
                             num_hidden_layers=num_hidden_layers, use_bf16=False)
    assert jnp.allclose(out, ref_f32, atol=1e-1, rtol=1e-1), \
        "Pallas output diverged from f32 reference beyond bf16 tolerance"

    print("KERNEL_OK")
</pallas_src>

<mosaic_0001>
module attributes {stable_mosaic.version = 11 : i64} {
  func.func @_rk4n_kernel(%arg0: i32, %arg1: memref<64x128xf32, #tpu.memory_space<vmem>>, %arg2: memref<64x128xf32, #tpu.memory_space<vmem>>, %arg3: memref<128x128xbf16, #tpu.memory_space<vmem>>, %arg4: memref<128x128xbf16, #tpu.memory_space<vmem>>, %arg5: memref<1x128xf32, #tpu.memory_space<vmem>>, %arg6: memref<1x128x128xbf16, #tpu.memory_space<vmem>>, %arg7: memref<1x1x128xf32, #tpu.memory_space<vmem>>, %arg8: memref<128x128xbf16, #tpu.memory_space<vmem>>, %arg9: memref<1x128xf32, #tpu.memory_space<vmem>>, %arg10: memref<64x128xf32, #tpu.memory_space<vmem>>) attributes {dimension_semantics = [#tpu.dimension_semantics<parallel>], iteration_bounds = array<i64: 1>, scalar_prefetch = 0 : i64, scratch_operands = 0 : i64, tpu.core_type = #tpu.core_type<tc>, window_params = [{transform_indices = @transform_0, window_bounds = array<i64: 64, 128>}, {transform_indices = @transform_1, window_bounds = array<i64: 64, 128>}, {pipeline_mode = #tpu.pipeline_mode<synchronous>, transform_indices = @transform_2, window_bounds = array<i64: 128, 128>}, {pipeline_mode = #tpu.pipeline_mode<synchronous>, transform_indices = @transform_3, window_bounds = array<i64: 128, 128>}, {pipeline_mode = #tpu.pipeline_mode<synchronous>, transform_indices = @transform_4, window_bounds = array<i64: 1, 128>}, {pipeline_mode = #tpu.pipeline_mode<synchronous>, transform_indices = @transform_5, window_bounds = array<i64: 1, 128, 128>}, {pipeline_mode = #tpu.pipeline_mode<synchronous>, transform_indices = @transform_6, window_bounds = array<i64: 1, 1, 128>}, {pipeline_mode = #tpu.pipeline_mode<synchronous>, transform_indices = @transform_7, window_bounds = array<i64: 128, 128>}, {pipeline_mode = #tpu.pipeline_mode<synchronous>, transform_indices = @transform_8, window_bounds = array<i64: 1, 128>}, {transform_indices = @transform_9, window_bounds = array<i64: 64, 128>}]} {
    %c0 = arith.constant 0 : index
    %c0_0 = arith.constant 0 : index
    %0 = vector.load %arg1[%c0, %c0_0] : memref<64x128xf32, #tpu.memory_space<vmem>>, vector<64x128xf32>
    %c0_1 = arith.constant 0 : index
    %c0_2 = arith.constant 0 : index
    %1 = vector.load %arg2[%c0_1, %c0_2] : memref<64x128xf32, #tpu.memory_space<vmem>>, vector<64x128xf32>
    %2 = arith.truncf %1 : vector<64x128xf32> to vector<64x128xbf16>
    %c0_3 = arith.constant 0 : index
    %c0_4 = arith.constant 0 : index
    %3 = vector.load %arg4[%c0_3, %c0_4] : memref<128x128xbf16, #tpu.memory_space<vmem>>, vector<128x128xbf16>
    %cst = arith.constant dense<0.000000e+00> : vector<64x128xf32>
    %4 = tpu.matmul %2, %3, %cst {dimension_numbers = #tpu.dot_dimension_numbers<[1], [0], [0], [1], [0, 0, 1, 1], [], []>} : vector<64x128xbf16>, vector<128x128xbf16>, vector<64x128xf32> -> vector<64x128xf32>
    %c0_5 = arith.constant 0 : index
    %c0_6 = arith.constant 0 : index
    %5 = vector.load %arg5[%c0_5, %c0_6] : memref<1x128xf32, #tpu.memory_space<vmem>>, vector<1x128xf32>
    %6 = vector.broadcast %5 : vector<1x128xf32> to vector<64x128xf32>
    %7 = arith.addf %4, %6 : vector<64x128xf32>
    %8 = arith.truncf %0 : vector<64x128xf32> to vector<64x128xbf16>
    %c0_7 = arith.constant 0 : index
    %c0_8 = arith.constant 0 : index
    %9 = vector.load %arg3[%c0_7, %c0_8] : memref<128x128xbf16, #tpu.memory_space<vmem>>, vector<128x128xbf16>
    %cst_9 = arith.constant dense<0.000000e+00> : vector<64x128xf32>
    %10 = tpu.matmul %8, %9, %cst_9 {dimension_numbers = #tpu.dot_dimension_numbers<[1], [0], [0], [1], [0, 0, 1, 1], [], []>} : vector<64x128xbf16>, vector<128x128xbf16>, vector<64x128xf32> -> vector<64x128xf32>
    %11 = arith.addf %10, %7 : vector<64x128xf32>
    %12 = arith.truncf %11 : vector<64x128xf32> to vector<64x128xbf16>
    %cst_10 = arith.constant 0.000000e+00 : bf16
    %13 = vector.broadcast %cst_10 : bf16 to vector<64x128xbf16>
    %14 = arith.maximumf %12, %13 : vector<64x128xbf16>
    %c0_11 = arith.constant 0 : index
    %c0_12 = arith.constant 0 : index
    %c0_13 = arith.constant 0 : index
    %15 = vector.load %arg6[%c0_11, %c0_12, %c0_13] : memref<1x128x128xbf16, #tpu.memory_space<vmem>>, vector<1x128x128xbf16>
    %16 = vector.shape_cast %15 : vector<1x128x128xbf16> to vector<128x128xbf16>
    %cst_14 = arith.constant dense<0.000000e+00> : vector<64x128xf32>
    %17 = tpu.matmul %14, %16, %cst_14 {dimension_numbers = #tpu.dot_dimension_numbers<[1], [0], [0], [1], [0, 0, 1, 1], [], []>} : vector<64x128xbf16>, vector<128x128xbf16>, vector<64x128xf32> -> vector<64x128xf32>
    %c0_15 = arith.constant 0 : index
    %c0_16 = arith.constant 0 : index
    %c0_17 = arith.constant 0 : index
    %18 = vector.load %arg7[%c0_15, %c0_16, %c0_17] : memref<1x1x128xf32, #tpu.memory_space<vmem>>, vector<1x1x128xf32>
    %19 = vector.shape_cast %18 : vector<1x1x128xf32> to vector<1x128xf32>
    %20 = vector.broadcast %19 : vector<1x128xf32> to vector<64x128xf32>
    %21 = arith.addf %17, %20 : vector<64x128xf32>
    %22 = arith.truncf %21 : vector<64x128xf32> to vector<64x128xbf16>
    %cst_18 = arith.constant 0.000000e+00 : bf16
    %23 = vector.broadcast %cst_18 : bf16 to vector<64x128xbf16>
    %24 = arith.maximumf %22, %23 : vector<64x128xbf16>
    %c0_19 = arith.constant 0 : index
    %c0_20 = arith.constant 0 : index
    %25 = vector.load %arg8[%c0_19, %c0_20] : memref<128x128xbf16, #tpu.memory_space<vmem>>, vector<128x128xbf16>
    %cst_21 = arith.constant dense<0.000000e+00> : vector<64x128xf32>
    %26 = tpu.matmul %24, %25, %cst_21 {dimension_numbers = #tpu.dot_dimension_numbers<[1], [0], [0], [1], [0, 0, 1, 1], [], []>} : vector<64x128xbf16>, vector<128x128xbf16>, vector<64x128xf32> -> vector<64x128xf32>
    %c0_22 = arith.constant 0 : index
    %c0_23 = arith.constant 0 : index
    %27 = vector.load %arg9[%c0_22, %c0_23] : memref<1x128xf32, #tpu.memory_space<vmem>>, vector<1x128xf32>
    %28 = vector.broadcast %27 : vector<1x128xf32> to vector<64x128xf32>
    %29 = arith.addf %26, %28 : vector<64x128xf32>
    %cst_24 = arith.constant 0.166666672 : f32
    %30 = vector.broadcast %cst_24 : f32 to vector<64x128xf32>
    %31 = arith.mulf %29, %30 : vector<64x128xf32>
    %32 = arith.addf %0, %31 : vector<64x128xf32>
    %cst_25 = arith.constant 5.000000e-01 : f32
    %33 = vector.broadcast %cst_25 : f32 to vector<64x128xf32>
    %34 = arith.mulf %33, %29 : vector<64x128xf32>
    %35 = arith.addf %0, %34 : vector<64x128xf32>
    %36 = arith.truncf %35 : vector<64x128xf32> to vector<64x128xbf16>
    %c0_26 = arith.constant 0 : index
    %c0_27 = arith.constant 0 : index
    %37 = vector.load %arg3[%c0_26, %c0_27] : memref<128x128xbf16, #tpu.memory_space<vmem>>, vector<128x128xbf16>
    %cst_28 = arith.constant dense<0.000000e+00> : vector<64x128xf32>
    %38 = tpu.matmul %36, %37, %cst_28 {dimension_numbers = #tpu.dot_dimension_numbers<[1], [0], [0], [1], [0, 0, 1, 1], [], []>} : vector<64x128xbf16>, vector<128x128xbf16>, vector<64x128xf32> -> vector<64x128xf32>
    %39 = arith.addf %38, %7 : vector<64x128xf32>
    %40 = arith.truncf %39 : vector<64x128xf32> to vector<64x128xbf16>
    %cst_29 = arith.constant 0.000000e+00 : bf16
    %41 = vector.broadcast %cst_29 : bf16 to vector<64x128xbf16>
    %42 = arith.maximumf %40, %41 : vector<64x128xbf16>
    %c0_30 = arith.constant 0 : index
    %c0_31 = arith.constant 0 : index
    %c0_32 = arith.constant 0 : index
    %43 = vector.load %arg6[%c0_30, %c0_31, %c0_32] : memref<1x128x128xbf16, #tpu.memory_space<vmem>>, vector<1x128x128xbf16>
    %44 = vector.shape_cast %43 : vector<1x128x128xbf16> to vector<128x128xbf16>
    %cst_33 = arith.constant dense<0.000000e+00> : vector<64x128xf32>
    %45 = tpu.matmul %42, %44, %cst_33 {dimension_numbers = #tpu.dot_dimension_numbers<[1], [0], [0], [1], [0, 0, 1, 1], [], []>} : vector<64x128xbf16>, vector<128x128xbf16>, vector<64x128xf32> -> vector<64x128xf32>
    %c0_34 = arith.constant 0 : index
    %c0_35 = arith.constant 0 : index
    %c0_36 = arith.constant 0 : index
    %46 = vector.load %arg7[%c0_34, %c0_35, %c0_36] : memref<1x1x128xf32, #tpu.memory_space<vmem>>, vector<1x1x128xf32>
    %47 = vector.shape_cast %46 : vector<1x1x128xf32> to vector<1x128xf32>
    %48 = vector.broadcast %47 : vector<1x128xf32> to vector<64x128xf32>
    %49 = arith.addf %45, %48 : vector<64x128xf32>
    %50 = arith.truncf %49 : vector<64x128xf32> to vector<64x128xbf16>
    %cst_37 = arith.constant 0.000000e+00 : bf16
    %51 = vector.broadcast %cst_37 : bf16 to vector<64x128xbf16>
    %52 = arith.maximumf %50, %51 : vector<64x128xbf16>
    %c0_38 = arith.constant 0 : index
    %c0_39 = arith.constant 0 : index
    %53 = vector.load %arg8[%c0_38, %c0_39] : memref<128x128xbf16, #tpu.memory_space<vmem>>, vector<128x128xbf16>
    %cst_40 = arith.constant dense<0.000000e+00> : vector<64x128xf32>
    %54 = tpu.matmul %52, %53, %cst_40 {dimension_numbers = #tpu.dot_dimension_numbers<[1], [0], [0], [1], [0, 0, 1, 1], [], []>} : vector<64x128xbf16>, vector<128x128xbf16>, vector<64x128xf32> -> vector<64x128xf32>
    %c0_41 = arith.constant 0 : index
    %c0_42 = arith.constant 0 : index
    %55 = vector.load %arg9[%c0_41, %c0_42] : memref<1x128xf32, #tpu.memory_space<vmem>>, vector<1x128xf32>
    %56 = vector.broadcast %55 : vector<1x128xf32> to vector<64x128xf32>
    %57 = arith.addf %54, %56 : vector<64x128xf32>
    %cst_43 = arith.constant 0.333333343 : f32
    %58 = vector.broadcast %cst_43 : f32 to vector<64x128xf32>
    %59 = arith.mulf %57, %58 : vector<64x128xf32>
    %60 = arith.addf %32, %59 : vector<64x128xf32>
    %cst_44 = arith.constant 5.000000e-01 : f32
    %61 = vector.broadcast %cst_44 : f32 to vector<64x128xf32>
    %62 = arith.mulf %61, %57 : vector<64x128xf32>
    %63 = arith.addf %0, %62 : vector<64x128xf32>
    %64 = arith.truncf %63 : vector<64x128xf32> to vector<64x128xbf16>
    %c0_45 = arith.constant 0 : index
    %c0_46 = arith.constant 0 : index
    %65 = vector.load %arg3[%c0_45, %c0_46] : memref<128x128xbf16, #tpu.memory_space<vmem>>, vector<128x128xbf16>
    %cst_47 = arith.constant dense<0.000000e+00> : vector<64x128xf32>
    %66 = tpu.matmul %64, %65, %cst_47 {dimension_numbers = #tpu.dot_dimension_numbers<[1], [0], [0], [1], [0, 0, 1, 1], [], []>} : vector<64x128xbf16>, vector<128x128xbf16>, vector<64x128xf32> -> vector<64x128xf32>
    %67 = arith.addf %66, %7 : vector<64x128xf32>
    %68 = arith.truncf %67 : vector<64x128xf32> to vector<64x128xbf16>
    %cst_48 = arith.constant 0.000000e+00 : bf16
    %69 = vector.broadcast %cst_48 : bf16 to vector<64x128xbf16>
    %70 = arith.maximumf %68, %69 : vector<64x128xbf16>
    %c0_49 = arith.constant 0 : index
    %c0_50 = arith.constant 0 : index
    %c0_51 = arith.constant 0 : index
    %71 = vector.load %arg6[%c0_49, %c0_50, %c0_51] : memref<1x128x128xbf16, #tpu.memory_space<vmem>>, vector<1x128x128xbf16>
    %72 = vector.shape_cast %71 : vector<1x128x128xbf16> to vector<128x128xbf16>
    %cst_52 = arith.constant dense<0.000000e+00> : vector<64x128xf32>
    %73 = tpu.matmul %70, %72, %cst_52 {dimension_numbers = #tpu.dot_dimension_numbers<[1], [0], [0], [1], [0, 0, 1, 1], [], []>} : vector<64x128xbf16>, vector<128x128xbf16>, vector<64x128xf32> -> vector<64x128xf32>
    %c0_53 = arith.constant 0 : index
    %c0_54 = arith.constant 0 : index
    %c0_55 = arith.constant 0 : index
    %74 = vector.load %arg7[%c0_53, %c0_54, %c0_55] : memref<1x1x128xf32, #tpu.memory_space<vmem>>, vector<1x1x128xf32>
    %75 = vector.shape_cast %74 : vector<1x1x128xf32> to vector<1x128xf32>
    %76 = vector.broadcast %75 : vector<1x128xf32> to vector<64x128xf32>
    %77 = arith.addf %73, %76 : vector<64x128xf32>
    %78 = arith.truncf %77 : vector<64x128xf32> to vector<64x128xbf16>
    %cst_56 = arith.constant 0.000000e+00 : bf16
    %79 = vector.broadcast %cst_56 : bf16 to vector<64x128xbf16>
    %80 = arith.maximumf %78, %79 : vector<64x128xbf16>
    %c0_57 = arith.constant 0 : index
    %c0_58 = arith.constant 0 : index
    %81 = vector.load %arg8[%c0_57, %c0_58] : memref<128x128xbf16, #tpu.memory_space<vmem>>, vector<128x128xbf16>
    %cst_59 = arith.constant dense<0.000000e+00> : vector<64x128xf32>
    %82 = tpu.matmul %80, %81, %cst_59 {dimension_numbers = #tpu.dot_dimension_numbers<[1], [0], [0], [1], [0, 0, 1, 1], [], []>} : vector<64x128xbf16>, vector<128x128xbf16>, vector<64x128xf32> -> vector<64x128xf32>
    %c0_60 = arith.constant 0 : index
    %c0_61 = arith.constant 0 : index
    %83 = vector.load %arg9[%c0_60, %c0_61] : memref<1x128xf32, #tpu.memory_space<vmem>>, vector<1x128xf32>
    %84 = vector.broadcast %83 : vector<1x128xf32> to vector<64x128xf32>
    %85 = arith.addf %82, %84 : vector<64x128xf32>
    %cst_62 = arith.constant 0.333333343 : f32
    %86 = vector.broadcast %cst_62 : f32 to vector<64x128xf32>
    %87 = arith.mulf %85, %86 : vector<64x128xf32>
    %88 = arith.addf %60, %87 : vector<64x128xf32>
    %89 = arith.addf %0, %85 : vector<64x128xf32>
    %90 = arith.truncf %89 : vector<64x128xf32> to vector<64x128xbf16>
    %c0_63 = arith.constant 0 : index
    %c0_64 = arith.constant 0 : index
    %91 = vector.load %arg3[%c0_63, %c0_64] : memref<128x128xbf16, #tpu.memory_space<vmem>>, vector<128x128xbf16>
    %cst_65 = arith.constant dense<0.000000e+00> : vector<64x128xf32>
    %92 = tpu.matmul %90, %91, %cst_65 {dimension_numbers = #tpu.dot_dimension_numbers<[1], [0], [0], [1], [0, 0, 1, 1], [], []>} : vector<64x128xbf16>, vector<128x128xbf16>, vector<64x128xf32> -> vector<64x128xf32>
    %93 = arith.addf %92, %7 : vector<64x128xf32>
    %94 = arith.truncf %93 : vector<64x128xf32> to vector<64x128xbf16>
    %cst_66 = arith.constant 0.000000e+00 : bf16
    %95 = vector.broadcast %cst_66 : bf16 to vector<64x128xbf16>
    %96 = arith.maximumf %94, %95 : vector<64x128xbf16>
    %c0_67 = arith.constant 0 : index
    %c0_68 = arith.constant 0 : index
    %c0_69 = arith.constant 0 : index
    %97 = vector.load %arg6[%c0_67, %c0_68, %c0_69] : memref<1x128x128xbf16, #tpu.memory_space<vmem>>, vector<1x128x128xbf16>
    %98 = vector.shape_cast %97 : vector<1x128x128xbf16> to vector<128x128xbf16>
    %cst_70 = arith.constant dense<0.000000e+00> : vector<64x128xf32>
    %99 = tpu.matmul %96, %98, %cst_70 {dimension_numbers = #tpu.dot_dimension_numbers<[1], [0], [0], [1], [0, 0, 1, 1], [], []>} : vector<64x128xbf16>, vector<128x128xbf16>, vector<64x128xf32> -> vector<64x128xf32>
    %c0_71 = arith.constant 0 : index
    %c0_72 = arith.constant 0 : index
    %c0_73 = arith.constant 0 : index
    %100 = vector.load %arg7[%c0_71, %c0_72, %c0_73] : memref<1x1x128xf32, #tpu.memory_space<vmem>>, vector<1x1x128xf32>
    %101 = vector.shape_cast %100 : vector<1x1x128xf32> to vector<1x128xf32>
    %102 = vector.broadcast %101 : vector<1x128xf32> to vector<64x128xf32>
    %103 = arith.addf %99, %102 : vector<64x128xf32>
    %104 = arith.truncf %103 : vector<64x128xf32> to vector<64x128xbf16>
    %cst_74 = arith.constant 0.000000e+00 : bf16
    %105 = vector.broadcast %cst_74 : bf16 to vector<64x128xbf16>
    %106 = arith.maximumf %104, %105 : vector<64x128xbf16>
    %c0_75 = arith.constant 0 : index
    %c0_76 = arith.constant 0 : index
    %107 = vector.load %arg8[%c0_75, %c0_76] : memref<128x128xbf16, #tpu.memory_space<vmem>>, vector<128x128xbf16>
    %cst_77 = arith.constant dense<0.000000e+00> : vector<64x128xf32>
    %108 = tpu.matmul %106, %107, %cst_77 {dimension_numbers = #tpu.dot_dimension_numbers<[1], [0], [0], [1], [0, 0, 1, 1], [], []>} : vector<64x128xbf16>, vector<128x128xbf16>, vector<64x128xf32> -> vector<64x128xf32>
    %c0_78 = arith.constant 0 : index
    %c0_79 = arith.constant 0 : index
    %109 = vector.load %arg9[%c0_78, %c0_79] : memref<1x128xf32, #tpu.memory_space<vmem>>, vector<1x128xf32>
    %110 = vector.broadcast %109 : vector<1x128xf32> to vector<64x128xf32>
    %111 = arith.addf %108, %110 : vector<64x128xf32>
    %cst_80 = arith.constant 0.166666672 : f32
    %112 = vector.broadcast %cst_80 : f32 to vector<64x128xf32>
    %113 = arith.mulf %111, %112 : vector<64x128xf32>
    %114 = arith.addf %88, %113 : vector<64x128xf32>
    %c0_81 = arith.constant 0 : index
    %c0_82 = arith.constant 0 : index
    %115 = vector.load %arg10[%c0_81, %c0_82] : memref<64x128xf32, #tpu.memory_space<vmem>>, vector<64x128xf32>
    tpu.vector_store %arg10[%c0_81, %c0_82], %114 {strides = array<i32>} : memref<64x128xf32, #tpu.memory_space<vmem>>, vector<64x128xf32>,
    return
  }
  func.func @transform_0(%arg0: i32) -> (i32, i32) {
    %c0_i32 = arith.constant 0 : i32
    %c0_i32_0 = arith.constant 0 : i32
    return %arg0, %c0_i32 : i32, i32
  }
  func.func @transform_1(%arg0: i32) -> (i32, i32) {
    %c0_i32 = arith.constant 0 : i32
    %c0_i32_0 = arith.constant 0 : i32
    return %arg0, %c0_i32 : i32, i32
  }
  func.func @transform_2(%arg0: i32) -> (i32, i32) {
    %c0_i32 = arith.constant 0 : i32
    %c0_i32_0 = arith.constant 0 : i32
    %c0_i32_1 = arith.constant 0 : i32
    return %c0_i32, %c0_i32_0 : i32, i32
  }
  func.func @transform_3(%arg0: i32) -> (i32, i32) {
    %c0_i32 = arith.constant 0 : i32
    %c0_i32_0 = arith.constant 0 : i32
    %c0_i32_1 = arith.constant 0 : i32
    return %c0_i32, %c0_i32_0 : i32, i32
  }
  func.func @transform_4(%arg0: i32) -> (i32, i32) {
    %c0_i32 = arith.constant 0 : i32
    %c0_i32_0 = arith.constant 0 : i32
    %c0_i32_1 = arith.constant 0 : i32
    return %c0_i32, %c0_i32_0 : i32, i32
  }
  func.func @transform_5(%arg0: i32) -> (i32, i32, i32) {
    %c0_i32 = arith.constant 0 : i32
    %c0_i32_0 = arith.constant 0 : i32
    %c0_i32_1 = arith.constant 0 : i32
    %c0_i32_2 = arith.constant 0 : i32
    return %c0_i32, %c0_i32_0, %c0_i32_1 : i32, i32, i32
  }
  func.func @transform_6(%arg0: i32) -> (i32, i32, i32) {
    %c0_i32 = arith.constant 0 : i32
    %c0_i32_0 = arith.constant 0 : i32
    %c0_i32_1 = arith.constant 0 : i32
    %c0_i32_2 = arith.constant 0 : i32
    return %c0_i32, %c0_i32_0, %c0_i32_1 : i32, i32, i32
  }
  func.func @transform_7(%arg0: i32) -> (i32, i32) {
    %c0_i32 = arith.constant 0 : i32
    %c0_i32_0 = arith.constant 0 : i32
    %c0_i32_1 = arith.constant 0 : i32
    return %c0_i32, %c0_i32_0 : i32, i32
  }
  func.func @transform_8(%arg0: i32) -> (i32, i32) {
    %c0_i32 = arith.constant 0 : i32
    %c0_i32_0 = arith.constant 0 : i32
    %c0_i32_1 = arith.constant 0 : i32
    return %c0_i32, %c0_i32_0 : i32, i32
  }
  func.func @transform_9(%arg0: i32) -> (i32, i32) {
    %c0_i32 = arith.constant 0 : i32
    %c0_i32_0 = arith.constant 0 : i32
    return %arg0, %c0_i32 : i32, i32
  }
}

</mosaic_0001>

<bundles_post_ra>
// kernel: tpu_custom_call.1
= control target key start
LH: loop header
LB: loop body
LE: loop exit
PB: predicated region body
PF: predicated region fallthrough
CT: control target
= control target key end

     0   :  { %14 = vsyncpa [#allocation3], 0  ;;  %s2038_s0 = inlined_call_operand.hbm [shape: f32[64,128], index: 0, kind: input, shape index: {}]   ;;  %s2039_s1 = inlined_call_operand.hbm [shape: f32[64,128], index: 1, kind: input, shape index: {}]   ;;  %s2040_s2 = inlined_call_operand.hbm [shape: bf16[128,128], index: 2, kind: input, shape index: {}]   ;;  %s2041_s3 = inlined_call_operand.hbm [shape: bf16[128,128], index: 3, kind: input, shape index: {}]   ;;  %s2042_s4 = inlined_call_operand.vmem [shape: f32[1,128], index: 4, kind: input, shape index: {}]   ;;  %s2043_s5 = inlined_call_operand.hbm [shape: bf16[1,128,128], index: 5, kind: input, shape index: {}]   ;;  %s2044_s6 = inlined_call_operand.vmem [shape: f32[1,1,128], index: 6, kind: input, shape index: {}]   ;;  %s2045_s7 = inlined_call_operand.hbm [shape: bf16[128,128], index: 7, kind: input, shape index: {}]   ;;  %s2046_s8 = inlined_call_operand.vmem [shape: f32[1,128], index: 8, kind: input, shape index: {}]   ;;  %s2047_s9 = inlined_call_operand.hbm [shape: f32[64,128], index: 9, kind: output, shape index: {}]  }
   0x1   :  { %15 = vsyncpa [#allocation6], 0 }
   0x2   :  { %16 = vsyncpa [#allocation9], 0 }
   0x3   :  { %17 = vsyncpa [#allocation12], 0 }
   0x4   :  { %18 = vsyncpa [#allocation4], 0  ;;  %s36_s11 = sshll.u32 %s2039_s1, 4  ;;  %s1534_s12 = smov [#allocation5]   ;;  %s37_s11 = int_to_ptr.hbm [resolvable:$true] %s36_s11 }
   0x5   :  { %s38_s13 = sshll.u32 %s1534_s12, 4  ;;  %s1535_s14 = smov 128   ;;  %s39_s13 = int_to_ptr.vmem [resolvable:$true] %s38_s13 }
   0x6   :  { %s1536_s15 = smov 8   ;;  %s62_s18 = sshll.u32 %s2041_s3, 4  ;;  %s63_s18 = int_to_ptr.hbm [resolvable:$true] %s62_s18 }
   0x7   :  { %44 = dma.hbm_to_vmem [thread:$0]  %s37_s11, 1024, %s39_s13, [#allocation6], %s1535_s14, %s1535_s14, %s1536_s15  }
   0x8   :  { %s1537_s19 = smov [#allocation8]   ;;  %s23_s1 = sshll.u32 %s2038_s0, 4  ;;  %s24_s1 = int_to_ptr.hbm [resolvable:$true] %s23_s1 }
   0x9   :  { %s64_s20 = sshll.u32 %s1537_s19, 4  ;;  %s1538_s23 = smov 64   ;;  %s65_s20 = int_to_ptr.vmem [resolvable:$true] %s64_s20 }
   0xa   :  { %s1539_s24 = smov 4   ;;  %s49_s27 = sshll.u32 %s2040_s2, 4  ;;  %s50_s27 = int_to_ptr.hbm [resolvable:$true] %s49_s27 }
   0xb   :  { %70 = dma.hbm_to_vmem [thread:$0]  %s63_s18, 1024, %s65_s20, [#allocation9], %s1538_s23, %s1538_s23, %s1539_s24  }
   0xc   :  { %s1540_s28 = smov [#allocation2]   ;;  %s1541_s3 = smov [#allocation7]  }
   0xd   :  { %s25_s29 = sshll.u32 %s1540_s28, 4  ;;  %s51_s30 = sshll.u32 %s1541_s3, 4  ;;  %s26_s29 = int_to_ptr.vmem [resolvable:$true] %s25_s29  ;;  %s52_s30 = int_to_ptr.vmem [resolvable:$true] %s51_s30 }
   0xe   :  { %31 = dma.hbm_to_vmem [thread:$0]  %s24_s1, 1024, %s26_s29, [#allocation3], %s1535_s14, %s1535_s14, %s1536_s15  }
   0xf   :  { %s77_s11 = sshll.u32 %s2043_s5, 4  ;;  %s92_s2 = sshll.u32 %s2045_s7, 4  ;;  %s78_s11 = int_to_ptr.hbm [resolvable:$true] %s77_s11  ;;  %s93_s2 = int_to_ptr.hbm [resolvable:$true] %s92_s2 }
  0x10   :  { %57 = dma.hbm_to_vmem [thread:$0]  %s50_s27, 1024, %s52_s30, [#allocation6], %s1538_s23, %s1538_s23, %s1539_s24  }
  0x11   :  { %s1542_s16 = smov [#allocation10]   ;;  %s1543_s18 = smov [#allocation11]  }
  0x12   :  { %s79_s17 = sshll.u32 %s1542_s16, 4  ;;  %s94_s19 = sshll.u32 %s1543_s18, 4  ;;  %s80_s17 = int_to_ptr.vmem [resolvable:$true] %s79_s17  ;;  %s95_s19 = int_to_ptr.vmem [resolvable:$true] %s94_s19 }
  0x13   :  { %85 = dma.hbm_to_vmem [thread:$0]  %s78_s11, 1024, %s80_s17, [#allocation9], %s1538_s23, %s1538_s23, %s1539_s24  }
  0x14   :  { %100 = dma.hbm_to_vmem [thread:$0]  %s93_s2, 1024, %s95_s19, [#allocation12], %s1538_s23, %s1538_s23, %s1539_s24  }
  0x15   :  { %1524 = dma.done.wait [#allocation3], 1024  }
  0x16   :  { %1525 = vsyncadd [#allocation3], 4294966272 }
  0x17   :  { %1526 = dma.done.wait [#allocation6], 2048  }
  0x18   :  { %1527 = vsyncadd [#allocation6], 4294965248 }
  0x19   :  { %1528 = dma.done.wait [#allocation9], 2048  }
  0x1a   :  { %1529 = vsyncadd [#allocation9], 4294965248 }
  0x1b   :  { %1530 = dma.done.wait [#allocation12], 1024  }
  0x1c   :  { %1531 = vsyncadd [#allocation12], 4294966272  ;;  %v1301_v0 = vld [vmem:[#allocation8 + $0x38] sm:$0xff]  ;;  %v1300_v1 = vld [vmem:[#allocation8 + $0x30] sm:$0xff]  ;;  %s1150_s24 = sshll.u32 %s2047_s9, 4  ;;  %s1151_s24 = int_to_ptr.hbm [resolvable:$true] %s1150_s24 }
  0x1d   :  { %1326 = vmatpush.bf16.msra.mxu1 %v1301_v0  ;;  %215 = vmatpush.bf16.msra.mxu0 %v1301_v0  ;;  %v1299_v2 = vld [vmem:[#allocation8 + $0x28] sm:$0xff]  ;;  %v1298_v3 = vld [vmem:[#allocation8 + $0x20] sm:$0xff]  ;;  %v1297_v4 = vld [vmem:[#allocation8 + $0x18] sm:$0xff] }
  0x1e   :  { %v1296_v5 = vld [vmem:[#allocation8 + $0x10] sm:$0xff]  ;;  %v1295_v6 = vld [vmem:[#allocation8 + $0x8] sm:$0xff]  ;;  %v1294_v7 = vld [vmem:[#allocation8] sm:$0xff] }
  0x1f   :  { %v139_v8 = vld [vmem:[#allocation5 + $0x20] sm:$0xff]  ;;  %v140_v9 = vld [vmem:[#allocation5 + $0x28] sm:$0xff]  ;;  %v1619_v12 = vld [vmem:[#allocation7 + $0x38] sm:$0xff] }
  0x20   :  { %v135_v10 = vld [vmem:[#allocation5] sm:$0xff]  ;;  %v136_v11 = vld [vmem:[#allocation5 + $0x8] sm:$0xff]  ;;  %v145_v13 = vpack.c.bf16 %v140_v9, %v139_v8  ;;  %v1622_v15 = vld [vmem:[#allocation7 + $0x30] sm:$0xff] }
  0x21   :  { %1327 = vmatpush.bf16.msra.mxu1 %v1300_v1  ;;  %216 = vmatpush.bf16.msra.mxu0 %v1300_v1  ;;  %v143_v14 = vpack.c.bf16 %v136_v11, %v135_v10  ;;  %v1626_v16 = vld [vmem:[#allocation7 + $0x28] sm:$0xff]  ;;  %v1630_v17 = vld [vmem:[#allocation7 + $0x20] sm:$0xff]  ;;  %v141_v18 = vld [vmem:[#allocation5 + $0x30] sm:$0xff] }
  0x22   :  { %v142_v19 = vld [vmem:[#allocation5 + $0x38] sm:$0xff]  ;;  %v137_v20 = vld [vmem:[#allocation5 + $0x10] sm:$0xff]  ;;  %v1642_v26 = vld [vmem:[#allocation7 + $0x8] sm:$0xff] }
  0x23   :  { %v138_v21 = vld [vmem:[#allocation5 + $0x18] sm:$0xff]  ;;  %v146_v23 = vpack.c.bf16 %v142_v19, %v141_v18  ;;  %v1638_v25 = vld [vmem:[#allocation7 + $0x10] sm:$0xff]  ;;  %v1646_v27 = vld [vmem:[#allocation7] sm:$0xff] }
  0x24   :  { %v1634_v22 = vld [vmem:[#allocation7 + $0x18] sm:$0xff]  ;;  %v144_v24 = vpack.c.bf16 %v138_v21, %v137_v20  ;;  %v1649_v28 = vld [vmem:[#allocation2] sm:$0xff]  ;;  %v1651_v29 = vld [vmem:[#allocation2 + $0x8] sm:$0xff] }
  0x25   :  { %1328 = vmatpush.bf16.msra.mxu1 %v1299_v2  ;;  %217 = vmatpush.bf16.msra.mxu0 %v1299_v2  ;;  %v244_v30 = vpack.c.bf16 %v1651_v29, %v1649_v28  ;;  %v1657_v31 = vld [vmem:[#allocation2 + $0x10] sm:$0xff]  ;;  %v1659_v32 = vld [vmem:[#allocation2 + $0x18] sm:$0xff]  ;;  %v1663_v34 = vld [vmem:[#allocation2 + $0x20] sm:$0xff] }
  0x26   :  { %v245_v33 = vpack.c.bf16 %v1659_v32, %v1657_v31  ;;  %v1665_v35 = vld [vmem:[#allocation2 + $0x28] sm:$0xff]  ;;  %v1669_v37 = vld [vmem:[#allocation2 + $0x30] sm:$0xff]  ;;  %v1671_v38 = vld [vmem:[#allocation2 + $0x38] sm:$0xff] }
  0x27   :  { %v246_v36 = vpack.c.bf16 %v1665_v35, %v1663_v34  ;;  %v247_v39 = vpack.c.bf16 %v1671_v38, %v1669_v37  ;;  %v1675_v40 = vld [vmem:[#allocation10 + $0x38] sm:$0xff]  ;;  %v1679_v41 = vld [vmem:[#allocation10 + $0x30] sm:$0xff]  ;;  %v1685_v42 = vld [vmem:[#allocation10 + $0x28] sm:$0xff] }
  0x28   :  { %437 = vmatpush.bf16.msra.mxu2 %v1675_v40  ;;  %v1689_v43 = vld [vmem:[#allocation10 + $0x20] sm:$0xff]  ;;  %v1695_v44 = vld [vmem:[#allocation10 + $0x18] sm:$0xff]  ;;  %v1700_v46 = vld [vmem:[#allocation10 + $0x10] sm:$0xff] }
  0x29   :  { %1329 = vmatpush.bf16.msra.mxu1 %v1298_v3  ;;  %218 = vmatpush.bf16.msra.mxu0 %v1298_v3  ;;  %v1705_v47 = vld [vmem:[#allocation10 + $0x8] sm:$0xff]  ;;  %v1710_v49 = vld [vmem:[#allocation10] sm:$0xff]  ;;  %v1730_v11 = vld [vmem:[#allocation11 + $0x38] sm:$0xff] }
  0x2a   :  { %v1353_v55 = vld [vmem:[%s2042_s4] ss:$0 sm:$0xff]  ;;  %562 = vmatpush.bf16.msra.mxu3 %v1730_v11  ;;  %v1740_v19 = vld [vmem:[#allocation11 + $0x28] sm:$0xff] }
  0x2c   :  { %438 = vmatpush.bf16.msra.mxu2 %v1679_v41 }
  0x2d   :  { %1330 = vmatpush.bf16.msra.mxu1 %v1297_v4  ;;  %219 = vmatpush.bf16.msra.mxu0 %v1297_v4 }
  0x30   :  { %439 = vmatpush.bf16.msra.mxu2 %v1685_v42 }
  0x31   :  { %1331 = vmatpush.bf16.msra.mxu1 %v1296_v5  ;;  %220 = vmatpush.bf16.msra.mxu0 %v1296_v5 }
  0x34   :  { %440 = vmatpush.bf16.msra.mxu2 %v1689_v43 }
  0x35   :  { %1332 = vmatpush.bf16.msra.mxu1 %v1295_v6  ;;  %221 = vmatpush.bf16.msra.mxu0 %v1295_v6 }
  0x38   :  { %441 = vmatpush.bf16.msra.mxu2 %v1695_v44 }
  0x39   :  { %1333 = vmatpush.bf16.msra.mxu1 %v1294_v7  ;;  %222 = vmatpush.bf16.msra.mxu0 %v1294_v7 }
  0x3c   :  { %233 = vmatmul.bf16.vlgmr.msra.gmra.mxu1 %v145_v13  ;;  %223 = vmatmul.bf16.vlgmr.msra.gmra.mxu0 %v143_v14  ;;  %v1733_v14 = vld [vmem:[#allocation11 + $0x30] sm:$0xff] }
  0x3d   :  { %312 = vmatpush.bf16.msrb.mxu1 %v1619_v12  ;;  %627 = vmatpush.bf16.msrb.mxu0 %v1619_v12 }
  0x3e   :  { %442 = vmatpush.bf16.msra.mxu2 %v1700_v46  ;;  %563 = vmatpush.bf16.msra.mxu3 %v1733_v14 }
  0x41   :  { %313 = vmatpush.bf16.msrb.mxu1 %v1622_v15  ;;  %628 = vmatpush.bf16.msrb.mxu0 %v1622_v15 }
  0x42   :  { %443 = vmatpush.bf16.msra.mxu2 %v1705_v47  ;;  %564 = vmatpush.bf16.msra.mxu3 %v1740_v19 }
  0x45   :  { %314 = vmatpush.bf16.msrb.mxu1 %v1626_v16  ;;  %629 = vmatpush.bf16.msrb.mxu0 %v1626_v16 }
  0x46   :  { %444 = vmatpush.bf16.msra.mxu2 %v1710_v49 }
  0x49   :  { %315 = vmatpush.bf16.msrb.mxu1 %v1630_v17  ;;  %630 = vmatpush.bf16.msrb.mxu0 %v1630_v17 }
  0x4a   :  { %741 = vmatpush.bf16.msrb.mxu2 %v1730_v11 }
  0x4c   :  { %238 = vmatmul.bf16.gmra.mxu1 %v146_v23  ;;  %228 = vmatmul.bf16.gmra.mxu0 %v144_v24 }
  0x4d   :  { %316 = vmatpush.bf16.msrb.mxu1 %v1634_v22  ;;  %631 = vmatpush.bf16.msrb.mxu0 %v1634_v22 }
  0x4e   :  { %742 = vmatpush.bf16.msrb.mxu2 %v1733_v14 }
  0x51   :  { %317 = vmatpush.bf16.msrb.mxu1 %v1638_v25  ;;  %632 = vmatpush.bf16.msrb.mxu0 %v1638_v25 }
  0x52   :  { %743 = vmatpush.bf16.msrb.mxu2 %v1740_v19 }
  0x55   :  { %318 = vmatpush.bf16.msrb.mxu1 %v1642_v26  ;;  %633 = vmatpush.bf16.msrb.mxu0 %v1642_v26 }
  0x59   :  { %319 = vmatpush.bf16.msrb.mxu1 %v1646_v27  ;;  %634 = vmatpush.bf16.msrb.mxu0 %v1646_v27 }
  0x5c   :  { %320 = vmatmul.bf16.vlgmr.msrb.gmra.mxu1 %v244_v30  ;;  %v1749_v30 = vld [vmem:[#allocation11 + $0x20] sm:$0xff] }
  0x5d   :  { %684 = vmatpush.bf16.msra.mxu1 %v1675_v40  ;;  %863 = vmatpush.bf16.msra.mxu0 %v1675_v40 }
  0x5e   :  { %565 = vmatpush.bf16.msra.mxu3 %v1749_v30  ;;  %744 = vmatpush.bf16.msrb.mxu2 %v1749_v30 }
  0x61   :  { %685 = vmatpush.bf16.msra.mxu1 %v1679_v41  ;;  %864 = vmatpush.bf16.msra.mxu0 %v1679_v41 }
  0x65   :  { %686 = vmatpush.bf16.msra.mxu1 %v1685_v42  ;;  %865 = vmatpush.bf16.msra.mxu0 %v1685_v42 }
  0x69   :  { %687 = vmatpush.bf16.msra.mxu1 %v1689_v43  ;;  %866 = vmatpush.bf16.msra.mxu0 %v1689_v43 }
  0x6c   :  { %325 = vmatmul.bf16.gmra.mxu1 %v245_v33 }
  0x6d   :  { %688 = vmatpush.bf16.msra.mxu1 %v1695_v44  ;;  %867 = vmatpush.bf16.msra.mxu0 %v1695_v44 }
  0x71   :  { %689 = vmatpush.bf16.msra.mxu1 %v1700_v46  ;;  %868 = vmatpush.bf16.msra.mxu0 %v1700_v46 }
  0x75   :  { %690 = vmatpush.bf16.msra.mxu1 %v1705_v47  ;;  %869 = vmatpush.bf16.msra.mxu0 %v1705_v47 }
  0x79   :  { %691 = vmatpush.bf16.msra.mxu1 %v1710_v49  ;;  %870 = vmatpush.bf16.msra.mxu0 %v1710_v49 }
  0x7c   :  { %330 = vmatmul.bf16.gmra.mxu1 %v246_v36 }
  0x7d   :  { %920 = vmatpush.bf16.msrb.mxu1 %v1730_v11 }
  0x81   :  { %921 = vmatpush.bf16.msrb.mxu1 %v1733_v14 }
  0x85   :  { %922 = vmatpush.bf16.msrb.mxu1 %v1740_v19 }
  0x89   :  { %923 = vmatpush.bf16.msrb.mxu1 %v1749_v30 }
  0x8c   :  { %335 = vmatmul.bf16.gmra.mxu1 %v247_v39 }
  0xb9   :  { %v234_v45 = vpop.f32.mrf.mxu1  ;;  %v224_v51 = vpop.f32.mrf.mxu0 }
  0xba   :  { %v1718_v56 = vadd.f32 %v1353_v55, %v224_v51  ;;  %v1737_v18 = vadd.f32 %v1353_v55, %v234_v45 }
  0xc1   :  { %v236_v48 = vpop.f32.mrf.mxu1  ;;  %v226_v53 = vpop.f32.mrf.mxu0 }
  0xc2   :  { %v1720_v57 = vadd.f32 %v1353_v55, %v226_v53  ;;  %v1744_v20 = vadd.f32 %v1353_v55, %v236_v48 }
  0xc9   :  { %v239_v50 = vpop.f32.mrf.mxu1  ;;  %v229_v61 = vpop.f32.mrf.mxu0 }
  0xca   :  { %v1724_v2 = vadd.f32 %v1353_v55, %v229_v61  ;;  %v1756_v48 = vadd.f32 %v1353_v55, %v239_v50  ;;  %v1767_v50 = vld [vmem:[#allocation11 + $0x10] sm:$0xff] }
  0xd1   :  { %v241_v52 = vpop.f32.mrf.mxu1  ;;  %v231_v3 = vpop.f32.mrf.mxu0 }
  0xd2   :  { %v1726_v4 = vadd.f32 %v1353_v55, %v231_v3  ;;  %v1758_v51 = vadd.f32 %v1353_v55, %v241_v52  ;;  %v1772_v52 = vld [vmem:[#allocation11 + $0x8] sm:$0xff]  ;;  %v1777_v55 = vld [vmem:[#allocation11] sm:$0xff] }
  0xd9   :  { %v321_v54 = vpop.f32.mrf.mxu1 }
  0xda   :  { %v322_v58 = vadd.f32 %v321_v54, %v1718_v56 }
  0xdc   :  { %v357_v62 = vmax.f32 %v322_v58, 0.0 }
  0xe1   :  { %v323_v59 = vpop.f32.mrf.mxu1 }
  0xe2   :  { %v324_v60 = vadd.f32 %v323_v59, %v1720_v57 }
  0xe4   :  { %v358_v63 = vmax.f32 %v324_v60, 0.0 }
  0xe6   :  { %v365_v0 = vpack.c.bf16 %v358_v63, %v357_v62  ;;  %v1762_v62 = vld [vmem:[#allocation11 + $0x18] sm:$0xff] }
  0xe7   :  { %566 = vmatpush.bf16.msra.mxu3 %v1762_v62  ;;  %745 = vmatpush.bf16.msrb.mxu2 %v1762_v62 }
  0xe8   :  { %445 = vmatmul.bf16.vlgmr.msra.gmra.mxu2 %v365_v0  ;;  %924 = vmatpush.bf16.msrb.mxu1 %v1762_v62 }
  0xe9   :  { %v326_v1 = vpop.f32.mrf.mxu1 }
  0xea   :  { %v327_v5 = vadd.f32 %v326_v1, %v1724_v2 }
  0xeb   :  { %567 = vmatpush.bf16.msra.mxu3 %v1767_v50  ;;  %746 = vmatpush.bf16.msrb.mxu2 %v1767_v50 }
  0xec   :  { %v359_v8 = vmax.f32 %v327_v5, 0.0  ;;  %925 = vmatpush.bf16.msrb.mxu1 %v1767_v50 }
  0xef   :  { %568 = vmatpush.bf16.msra.mxu3 %v1772_v52  ;;  %747 = vmatpush.bf16.msrb.mxu2 %v1772_v52 }
  0xf0   :  { %926 = vmatpush.bf16.msrb.mxu1 %v1772_v52 }
  0xf1   :  { %v328_v6 = vpop.f32.mrf.mxu1 }
  0xf2   :  { %v329_v7 = vadd.f32 %v328_v6, %v1726_v4 }
  0xf3   :  { %569 = vmatpush.bf16.msra.mxu3 %v1777_v55  ;;  %748 = vmatpush.bf16.msrb.mxu2 %v1777_v55 }
  0xf4   :  { %v360_v9 = vmax.f32 %v329_v7, 0.0  ;;  %927 = vmatpush.bf16.msrb.mxu1 %v1777_v55 }
  0xf6   :  { %v366_v10 = vpack.c.bf16 %v360_v9, %v359_v8 }
  0xf7   :  { %806 = vmatpush.bf16.msrb.mxu3 %v1619_v12  ;;  %977 = vmatpush.bf16.msra.mxu2 %v1619_v12  ;;  %v1797_v12 = vld [vmem:[%s2044_s6] ss:$0 sm:$0xff] }
  0xf8   :  { %450 = vmatmul.bf16.gmra.mxu2 %v366_v10 }
  0xf9   :  { %v331_v13 = vpop.f32.mrf.mxu1 }
  0xfa   :  { %v332_v21 = vadd.f32 %v331_v13, %v1737_v18 }
  0xfb   :  { %807 = vmatpush.bf16.msrb.mxu3 %v1622_v15  ;;  %978 = vmatpush.bf16.msra.mxu2 %v1622_v15 }
  0xfc   :  { %v361_v33 = vmax.f32 %v332_v21, 0.0 }
  0xff   :  { %808 = vmatpush.bf16.msrb.mxu3 %v1626_v16  ;;  %979 = vmatpush.bf16.msra.mxu2 %v1626_v16 }
 0x101   :  { %v333_v23 = vpop.f32.mrf.mxu1 }
 0x102   :  { %v334_v24 = vadd.f32 %v333_v23, %v1744_v20 }
 0x103   :  { %809 = vmatpush.bf16.msrb.mxu3 %v1630_v17  ;;  %980 = vmatpush.bf16.msra.mxu2 %v1630_v17 }
 0x104   :  { %v362_v36 = vmax.f32 %v334_v24, 0.0 }
 0x106   :  { %v367_v39 = vpack.c.bf16 %v362_v36, %v361_v33 }
 0x107   :  { %810 = vmatpush.bf16.msrb.mxu3 %v1634_v22  ;;  %981 = vmatpush.bf16.msra.mxu2 %v1634_v22 }
 0x108   :  { %455 = vmatmul.bf16.gmra.mxu2 %v367_v39 }
 0x109   :  { %v336_v45 = vpop.f32.mrf.mxu1 }
 0x10a   :  { %v337_v53 = vadd.f32 %v336_v45, %v1756_v48 }
 0x10b   :  { %811 = vmatpush.bf16.msrb.mxu3 %v1638_v25  ;;  %982 = vmatpush.bf16.msra.mxu2 %v1638_v25 }
 0x10c   :  { %v363_v59 = vmax.f32 %v337_v53, 0.0 }
 0x10f   :  { %812 = vmatpush.bf16.msrb.mxu3 %v1642_v26  ;;  %983 = vmatpush.bf16.msra.mxu2 %v1642_v26 }
 0x111   :  { %v338_v54 = vpop.f32.mrf.mxu1 }
 0x112   :  { %v339_v58 = vadd.f32 %v338_v54, %v1758_v51 }
 0x113   :  { %813 = vmatpush.bf16.msrb.mxu3 %v1646_v27  ;;  %984 = vmatpush.bf16.msra.mxu2 %v1646_v27 }
 0x114   :  { %v364_v60 = vmax.f32 %v339_v58, 0.0 }
 0x116   :  { %v368_v61 = vpack.c.bf16 %v364_v60, %v363_v59 }
 0x118   :  { %460 = vmatmul.bf16.gmra.mxu2 %v368_v61 }
 0x16b   :  { %v446_v63 = vpop.f32.mrf.mxu2 }
 0x16c   :  { %v447_v15 = vadd.f32 %v1797_v12, %v446_v63 }
 0x16e   :  { %v482_v22 = vmax.f32 %v447_v15, 0.0 }
 0x173   :  { %v448_v16 = vpop.f32.mrf.mxu2 }
 0x174   :  { %v449_v17 = vadd.f32 %v1797_v12, %v448_v16 }
 0x176   :  { %v483_v25 = vmax.f32 %v449_v17, 0.0 }
 0x178   :  { %v490_v0 = vpack.c.bf16 %v483_v25, %v482_v22 }
 0x17a   :  { %570 = vmatmul.bf16.vlgmr.msra.gmra.mxu3 %v490_v0 }
 0x17b   :  { %v451_v1 = vpop.f32.mrf.mxu2  ;;  %1034 = vmatpush.bf16.msra.mxu3 %v1675_v40 }
 0x17c   :  { %v452_v26 = vadd.f32 %v1797_v12, %v451_v1 }
 0x17e   :  { %v484_v6 = vmax.f32 %v452_v26, 0.0 }
 0x17f   :  { %1035 = vmatpush.bf16.msra.mxu3 %v1679_v41 }
 0x183   :  { %v453_v3 = vpop.f32.mrf.mxu2  ;;  %1036 = vmatpush.bf16.msra.mxu3 %v1685_v42 }
 0x184   :  { %v454_v5 = vadd.f32 %v1797_v12, %v453_v3 }
 0x186   :  { %v485_v7 = vmax.f32 %v454_v5, 0.0 }
 0x187   :  { %1037 = vmatpush.bf16.msra.mxu3 %v1689_v43 }
 0x188   :  { %v491_v27 = vpack.c.bf16 %v485_v7, %v484_v6 }
 0x18a   :  { %575 = vmatmul.bf16.gmra.mxu3 %v491_v27 }
 0x18b   :  { %v456_v8 = vpop.f32.mrf.mxu2  ;;  %1038 = vmatpush.bf16.msra.mxu3 %v1695_v44 }
 0x18c   :  { %v457_v40 = vadd.f32 %v1797_v12, %v456_v8 }
 0x18e   :  { %v486_v9 = vmax.f32 %v457_v40, 0.0 }
 0x18f   :  { %1039 = vmatpush.bf16.msra.mxu3 %v1700_v46 }
 0x193   :  { %v458_v41 = vpop.f32.mrf.mxu2  ;;  %1040 = vmatpush.bf16.msra.mxu3 %v1705_v47  ;;  %v1822_v47 = vld [vmem:[%s2046_s8] ss:$0 sm:$0xff]  ;;  %s1544_s8 = smov [#allocation13]  }
 0x194   :  { %v459_v42 = vadd.f32 %v1797_v12, %v458_v41  ;;  %s1148_s22 = sshll.u32 %s1544_s8, 4  ;;  %s1149_s22 = int_to_ptr.vmem [resolvable:$true] %s1148_s22 }
 0x196   :  { %v487_v10 = vmax.f32 %v459_v42, 0.0 }
 0x197   :  { %1041 = vmatpush.bf16.msra.mxu3 %v1710_v49 }
 0x198   :  { %v492_v13 = vpack.c.bf16 %v487_v10, %v486_v9 }
 0x19a   :  { %580 = vmatmul.bf16.gmra.mxu3 %v492_v13 }
 0x19b   :  { %v461_v43 = vpop.f32.mrf.mxu2 }
 0x19c   :  { %v462_v21 = vadd.f32 %v1797_v12, %v461_v43 }
 0x19e   :  { %v488_v46 = vmax.f32 %v462_v21, 0.0 }
 0x1a3   :  { %v463_v23 = vpop.f32.mrf.mxu2 }
 0x1a4   :  { %v464_v44 = vadd.f32 %v1797_v12, %v463_v23 }
 0x1a6   :  { %v489_v24 = vmax.f32 %v464_v44, 0.0 }
 0x1a8   :  { %v493_v33 = vpack.c.bf16 %v489_v24, %v488_v46 }
 0x1aa   :  { %585 = vmatmul.bf16.gmra.mxu3 %v493_v33 }
 0x1fd   :  { %v571_v36 = vpop.f32.mrf.mxu3 }
 0x1fe   :  { %v1825_v49 = vadd.f32 %v1822_v47, %v571_v36 }
 0x200   :  { %v607_v45 = vmul.f32 0.5, %v1825_v49 }
 0x202   :  { %v615_v58 = vadd.f32 %v607_v45, %v1649_v28 }
 0x205   :  { %v573_v39 = vpop.f32.mrf.mxu3 }
 0x206   :  { %v1829_v53 = vadd.f32 %v1822_v47, %v573_v39 }
 0x208   :  { %v608_v54 = vmul.f32 0.5, %v1829_v53 }
 0x20a   :  { %v616_v59 = vadd.f32 %v608_v54, %v1651_v29 }
 0x20c   :  { %v623_v60 = vpack.c.bf16 %v616_v59, %v615_v58 }
 0x20d   :  { %v576_v61 = vpop.f32.mrf.mxu3 }
 0x20e   :  { %635 = vmatmul.bf16.vlgmr.msrb.gmra.mxu0 %v623_v60  ;;  %v1836_v63 = vadd.f32 %v1822_v47, %v576_v61 }
 0x20f   :  { %1091 = vmatpush.bf16.msrb.mxu0 %v1730_v11 }
 0x210   :  { %v609_v16 = vmul.f32 0.5, %v1836_v63 }
 0x212   :  { %v617_v25 = vadd.f32 %v609_v16, %v1657_v31 }
 0x213   :  { %1092 = vmatpush.bf16.msrb.mxu0 %v1733_v14 }
 0x215   :  { %v578_v15 = vpop.f32.mrf.mxu3 }
 0x216   :  { %v1841_v17 = vadd.f32 %v1822_v47, %v578_v15 }
 0x217   :  { %1093 = vmatpush.bf16.msrb.mxu0 %v1740_v19 }
 0x218   :  { %v610_v22 = vmul.f32 0.5, %v1841_v17 }
 0x21a   :  { %v618_v0 = vadd.f32 %v610_v22, %v1659_v32 }
 0x21b   :  { %1094 = vmatpush.bf16.msrb.mxu0 %v1749_v30 }
 0x21c   :  { %v624_v1 = vpack.c.bf16 %v618_v0, %v617_v25 }
 0x21d   :  { %v581_v26 = vpop.f32.mrf.mxu3 }
 0x21e   :  { %640 = vmatmul.bf16.gmra.mxu0 %v624_v1  ;;  %v1850_v3 = vadd.f32 %v1822_v47, %v581_v26 }
 0x21f   :  { %1095 = vmatpush.bf16.msrb.mxu0 %v1762_v62 }
 0x220   :  { %v611_v6 = vmul.f32 0.5, %v1850_v3 }
 0x222   :  { %v619_v8 = vadd.f32 %v611_v6, %v1663_v34 }
 0x223   :  { %1096 = vmatpush.bf16.msrb.mxu0 %v1767_v50 }
 0x225   :  { %v583_v5 = vpop.f32.mrf.mxu3 }
 0x226   :  { %v1855_v7 = vadd.f32 %v1822_v47, %v583_v5 }
 0x227   :  { %1097 = vmatpush.bf16.msrb.mxu0 %v1772_v52 }
 0x228   :  { %v612_v27 = vmul.f32 0.5, %v1855_v7 }
 0x22a   :  { %v620_v40 = vadd.f32 %v612_v27, %v1665_v35 }
 0x22b   :  { %1098 = vmatpush.bf16.msrb.mxu0 %v1777_v55 }
 0x22c   :  { %v625_v41 = vpack.c.bf16 %v620_v40, %v619_v8 }
 0x22d   :  { %v586_v42 = vpop.f32.mrf.mxu3 }
 0x22e   :  { %645 = vmatmul.bf16.gmra.mxu0 %v625_v41  ;;  %v1863_v9 = vadd.f32 %v1822_v47, %v586_v42 }
 0x230   :  { %v613_v13 = vmul.f32 0.5, %v1863_v9 }
 0x232   :  { %v621_v23 = vadd.f32 %v613_v13, %v1669_v37 }
 0x235   :  { %v588_v10 = vpop.f32.mrf.mxu3 }
 0x236   :  { %v1867_v43 = vadd.f32 %v1822_v47, %v588_v10 }
 0x238   :  { %v614_v21 = vmul.f32 0.5, %v1867_v43 }
 0x23a   :  { %v622_v44 = vadd.f32 %v614_v21, %v1671_v38 }
 0x23c   :  { %v626_v46 = vpack.c.bf16 %v622_v44, %v621_v23 }
 0x23e   :  { %650 = vmatmul.bf16.gmra.mxu0 %v626_v46 }
 0x28b   :  { %v636_v24 = vpop.f32.mrf.mxu0 }
 0x28c   :  { %v637_v33 = vadd.f32 %v636_v24, %v1718_v56 }
 0x28e   :  { %v672_v45 = vmax.f32 %v637_v33, 0.0 }
 0x293   :  { %v638_v36 = vpop.f32.mrf.mxu0 }
 0x294   :  { %v639_v39 = vadd.f32 %v638_v36, %v1720_v57 }
 0x296   :  { %v673_v54 = vmax.f32 %v639_v39, 0.0 }
 0x298   :  { %v680_v58 = vpack.c.bf16 %v673_v54, %v672_v45 }
 0x29a   :  { %692 = vmatmul.bf16.vlgmr.msra.gmra.mxu1 %v680_v58 }
 0x29b   :  { %v641_v59 = vpop.f32.mrf.mxu0 }
 0x29c   :  { %v642_v60 = vadd.f32 %v641_v59, %v1724_v2 }
 0x29e   :  { %v674_v16 = vmax.f32 %v642_v60, 0.0 }
 0x2a3   :  { %v643_v61 = vpop.f32.mrf.mxu0 }
 0x2a4   :  { %v644_v15 = vadd.f32 %v643_v61, %v1726_v4 }
 0x2a6   :  { %v675_v22 = vmax.f32 %v644_v15, 0.0 }
 0x2a8   :  { %v681_v25 = vpack.c.bf16 %v675_v22, %v674_v16 }
 0x2aa   :  { %697 = vmatmul.bf16.gmra.mxu1 %v681_v25 }
 0x2ab   :  { %v646_v0 = vpop.f32.mrf.mxu0 }
 0x2ac   :  { %v647_v1 = vadd.f32 %v646_v0, %v1737_v18 }
 0x2ae   :  { %v676_v6 = vmax.f32 %v647_v1, 0.0 }
 0x2b3   :  { %v648_v26 = vpop.f32.mrf.mxu0 }
 0x2b4   :  { %v649_v5 = vadd.f32 %v648_v26, %v1744_v20 }
 0x2b6   :  { %v677_v27 = vmax.f32 %v649_v5, 0.0 }
 0x2b8   :  { %v682_v8 = vpack.c.bf16 %v677_v27, %v676_v6 }
 0x2ba   :  { %702 = vmatmul.bf16.gmra.mxu1 %v682_v8 }
 0x2bb   :  { %v651_v40 = vpop.f32.mrf.mxu0 }
 0x2bc   :  { %v652_v41 = vadd.f32 %v651_v40, %v1756_v48 }
 0x2be   :  { %v678_v13 = vmax.f32 %v652_v41, 0.0 }
 0x2c3   :  { %v653_v42 = vpop.f32.mrf.mxu0 }
 0x2c4   :  { %v654_v10 = vadd.f32 %v653_v42, %v1758_v51 }
 0x2c6   :  { %v679_v21 = vmax.f32 %v654_v10, 0.0  ;;  %v592_v10 = vmul.f32 0.16666667, %v1829_v53 }
 0x2c8   :  { %v683_v23 = vpack.c.bf16 %v679_v21, %v678_v13 }
 0x2ca   :  { %707 = vmatmul.bf16.gmra.mxu1 %v683_v23 }
 0x317   :  { %v693_v44 = vpop.f32.mrf.mxu1 }
 0x318   :  { %v694_v46 = vadd.f32 %v1797_v12, %v693_v44  ;;  %v600_v44 = vadd.f32 %v592_v10, %v1651_v29 }
 0x31a   :  { %v729_v36 = vmax.f32 %v694_v46, 0.0 }
 0x31f   :  { %v695_v24 = vpop.f32.mrf.mxu1 }
 0x320   :  { %v696_v33 = vadd.f32 %v1797_v12, %v695_v24 }
 0x322   :  { %v730_v39 = vmax.f32 %v696_v33, 0.0 }
 0x324   :  { %v737_v45 = vpack.c.bf16 %v730_v39, %v729_v36  ;;  %v593_v39 = vmul.f32 0.16666667, %v1836_v63 }
 0x326   :  { %749 = vmatmul.bf16.vlgmr.msrb.gmra.mxu2 %v737_v45 }
 0x327   :  { %v698_v54 = vpop.f32.mrf.mxu1  ;;  %1334 = vmatpush.bf16.msrb.mxu2 %v1730_v11 }
 0x328   :  { %v699_v58 = vadd.f32 %v1797_v12, %v698_v54 }
 0x32a   :  { %v731_v61 = vmax.f32 %v699_v58, 0.0  ;;  %v601_v58 = vadd.f32 %v593_v39, %v1657_v31 }
 0x32b   :  { %1335 = vmatpush.bf16.msrb.mxu2 %v1733_v14 }
 0x32f   :  { %v700_v59 = vpop.f32.mrf.mxu1  ;;  %1336 = vmatpush.bf16.msrb.mxu2 %v1740_v19 }
 0x330   :  { %v701_v60 = vadd.f32 %v1797_v12, %v700_v59 }
 0x332   :  { %v732_v15 = vmax.f32 %v701_v60, 0.0 }
 0x333   :  { %1337 = vmatpush.bf16.msrb.mxu2 %v1749_v30 }
 0x334   :  { %v738_v16 = vpack.c.bf16 %v732_v15, %v731_v61  ;;  %v594_v61 = vmul.f32 0.16666667, %v1841_v17 }
 0x336   :  { %754 = vmatmul.bf16.gmra.mxu2 %v738_v16 }
 0x337   :  { %v703_v22 = vpop.f32.mrf.mxu1  ;;  %1338 = vmatpush.bf16.msrb.mxu2 %v1762_v62 }
 0x338   :  { %v704_v11 = vadd.f32 %v1797_v12, %v703_v22 }
 0x33a   :  { %v733_v25 = vmax.f32 %v704_v11, 0.0  ;;  %v602_v11 = vadd.f32 %v594_v61, %v1659_v32 }
 0x33b   :  { %1339 = vmatpush.bf16.msrb.mxu2 %v1767_v50 }
 0x33f   :  { %v705_v14 = vpop.f32.mrf.mxu1  ;;  %1340 = vmatpush.bf16.msrb.mxu2 %v1772_v52  ;;  %v591_v52 = vmul.f32 0.16666667, %v1825_v49 }
 0x340   :  { %v706_v19 = vadd.f32 %v1797_v12, %v705_v14 }
 0x341   :  { %v599_v41 = vadd.f32 %v591_v52, %v1649_v28 }
 0x342   :  { %v734_v0 = vmax.f32 %v706_v19, 0.0 }
 0x343   :  { %1341 = vmatpush.bf16.msrb.mxu2 %v1777_v55 }
 0x344   :  { %v739_v1 = vpack.c.bf16 %v734_v0, %v733_v25 }
 0x346   :  { %759 = vmatmul.bf16.gmra.mxu2 %v739_v1  ;;  %v595_v1 = vmul.f32 0.16666667, %v1850_v3 }
 0x347   :  { %v708_v30 = vpop.f32.mrf.mxu1 }
 0x348   :  { %v709_v26 = vadd.f32 %v1797_v12, %v708_v30 }
 0x34a   :  { %v735_v50 = vmax.f32 %v709_v26, 0.0 }
 0x34f   :  { %v710_v5 = vpop.f32.mrf.mxu1 }
 0x350   :  { %v711_v62 = vadd.f32 %v1797_v12, %v710_v5  ;;  %v603_v5 = vadd.f32 %v595_v1, %v1663_v34 }
 0x352   :  { %v736_v6 = vmax.f32 %v711_v62, 0.0 }
 0x354   :  { %v740_v27 = vpack.c.bf16 %v736_v6, %v735_v50  ;;  %v596_v6 = vmul.f32 0.16666667, %v1855_v7 }
 0x356   :  { %764 = vmatmul.bf16.gmra.mxu2 %v740_v27 }
 0x3a9   :  { %v750_v8 = vpop.f32.mrf.mxu2 }
 0x3aa   :  { %v751_v40 = vadd.f32 %v1822_v47, %v750_v8 }
 0x3ac   :  { %v770_v55 = vmul.f32 0.33333334, %v751_v40  ;;  %v786_v21 = vmul.f32 0.5, %v751_v40  ;;  %v604_v40 = vadd.f32 %v596_v6, %v1665_v35 }
 0x3ae   :  { %v1899_v42 = vadd.f32 %v770_v55, %v599_v41  ;;  %v794_v49 = vadd.f32 %v786_v21, %v1649_v28  ;;  %v597_v21 = vmul.f32 0.16666667, %v1863_v9 }
 0x3b1   :  { %v752_v13 = vpop.f32.mrf.mxu2 }
 0x3b2   :  { %v753_v23 = vadd.f32 %v1822_v47, %v752_v13 }
 0x3b4   :  { %v771_v46 = vmul.f32 0.33333334, %v753_v23  ;;  %v787_v24 = vmul.f32 0.5, %v753_v23 }
 0x3b6   :  { %v1905_v33 = vadd.f32 %v771_v46, %v600_v44  ;;  %v795_v36 = vadd.f32 %v787_v24, %v1651_v29  ;;  %v605_v46 = vadd.f32 %v597_v21, %v1669_v37 }
 0x3b8   :  { %v802_v45 = vpack.c.bf16 %v795_v36, %v794_v49  ;;  %v598_v36 = vmul.f32 0.16666667, %v1867_v43 }
 0x3b9   :  { %v755_v54 = vpop.f32.mrf.mxu2 }
 0x3ba   :  { %v756_v53 = vadd.f32 %v1822_v47, %v755_v54  ;;  %814 = vmatmul.bf16.vlgmr.msrb.gmra.mxu3 %v802_v45 }
 0x3bc   :  { %v772_v59 = vmul.f32 0.33333334, %v756_v53  ;;  %v788_v16 = vmul.f32 0.5, %v756_v53  ;;  %v606_v53 = vadd.f32 %v598_v36, %v1671_v38 }
 0x3be   :  { %v1911_v60 = vadd.f32 %v772_v59, %v601_v58  ;;  %v796_v25 = vadd.f32 %v788_v16, %v1657_v31 }
 0x3c1   :  { %v757_v15 = vpop.f32.mrf.mxu2 }
 0x3c2   :  { %v758_v22 = vadd.f32 %v1822_v47, %v757_v15 }
 0x3c4   :  { %v773_v14 = vmul.f32 0.33333334, %v758_v22  ;;  %v789_v63 = vmul.f32 0.5, %v758_v22 }
 0x3c6   :  { %v1916_v19 = vadd.f32 %v773_v14, %v602_v11  ;;  %v797_v0 = vadd.f32 %v789_v63, %v1659_v32 }
 0x3c8   :  { %v803_v30 = vpack.c.bf16 %v797_v0, %v796_v25 }
 0x3c9   :  { %v760_v26 = vpop.f32.mrf.mxu2 }
 0x3ca   :  { %v761_v17 = vadd.f32 %v1822_v47, %v760_v26  ;;  %819 = vmatmul.bf16.gmra.mxu3 %v803_v30 }
 0x3cc   :  { %v774_v62 = vmul.f32 0.33333334, %v761_v17  ;;  %v790_v52 = vmul.f32 0.5, %v761_v17 }
 0x3ce   :  { %v1923_v50 = vadd.f32 %v774_v62, %v603_v5  ;;  %v798_v10 = vadd.f32 %v790_v52, %v1663_v34 }
 0x3d1   :  { %v762_v27 = vpop.f32.mrf.mxu2 }
 0x3d2   :  { %v763_v8 = vadd.f32 %v1822_v47, %v762_v27 }
 0x3d4   :  { %v775_v41 = vmul.f32 0.33333334, %v763_v8  ;;  %v791_v3 = vmul.f32 0.5, %v763_v8 }
 0x3d6   :  { %v1928_v55 = vadd.f32 %v775_v41, %v604_v40  ;;  %v799_v13 = vadd.f32 %v791_v3, %v1665_v35 }
 0x3d8   :  { %v804_v23 = vpack.c.bf16 %v799_v13, %v798_v10 }
 0x3d9   :  { %v765_v44 = vpop.f32.mrf.mxu2 }
 0x3da   :  { %v766_v7 = vadd.f32 %v1822_v47, %v765_v44  ;;  %824 = vmatmul.bf16.gmra.mxu3 %v804_v23 }
 0x3dc   :  { %v776_v24 = vmul.f32 0.33333334, %v766_v7  ;;  %v792_v45 = vmul.f32 0.5, %v766_v7 }
 0x3de   :  { %v1935_v49 = vadd.f32 %v776_v24, %v605_v46  ;;  %v800_v61 = vadd.f32 %v792_v45, %v1669_v37 }
 0x3e1   :  { %v767_v39 = vpop.f32.mrf.mxu2 }
 0x3e2   :  { %v768_v54 = vadd.f32 %v1822_v47, %v767_v39 }
 0x3e4   :  { %v777_v58 = vmul.f32 0.33333334, %v768_v54  ;;  %v793_v9 = vmul.f32 0.5, %v768_v54 }
 0x3e6   :  { %v1940_v59 = vadd.f32 %v777_v58, %v606_v53  ;;  %v801_v15 = vadd.f32 %v793_v9, %v1671_v38 }
 0x3e8   :  { %v805_v16 = vpack.c.bf16 %v801_v15, %v800_v61 }
 0x3ea   :  { %829 = vmatmul.bf16.gmra.mxu3 %v805_v16 }
 0x43d   :  { %v815_v22 = vpop.f32.mrf.mxu3 }
 0x43e   :  { %v816_v11 = vadd.f32 %v815_v22, %v1718_v56 }
 0x440   :  { %v851_v63 = vmax.f32 %v816_v11, 0.0 }
 0x445   :  { %v817_v43 = vpop.f32.mrf.mxu3 }
 0x446   :  { %v818_v14 = vadd.f32 %v817_v43, %v1720_v57 }
 0x448   :  { %v852_v25 = vmax.f32 %v818_v14, 0.0 }
 0x44a   :  { %v859_v0 = vpack.c.bf16 %v852_v25, %v851_v63 }
 0x44c   :  { %871 = vmatmul.bf16.vlgmr.msra.gmra.mxu0 %v859_v0 }
 0x44d   :  { %v820_v1 = vpop.f32.mrf.mxu3 }
 0x44e   :  { %v821_v30 = vadd.f32 %v820_v1, %v1724_v2 }
 0x450   :  { %v853_v5 = vmax.f32 %v821_v30, 0.0 }
 0x455   :  { %v822_v26 = vpop.f32.mrf.mxu3 }
 0x456   :  { %v823_v17 = vadd.f32 %v822_v26, %v1726_v4 }
 0x458   :  { %v854_v62 = vmax.f32 %v823_v17, 0.0 }
 0x45a   :  { %v860_v6 = vpack.c.bf16 %v854_v62, %v853_v5 }
 0x45c   :  { %876 = vmatmul.bf16.gmra.mxu0 %v860_v6 }
 0x45d   :  { %v825_v27 = vpop.f32.mrf.mxu3 }
 0x45e   :  { %v826_v52 = vadd.f32 %v825_v27, %v1737_v18 }
 0x460   :  { %v855_v41 = vmax.f32 %v826_v52, 0.0 }
 0x465   :  { %v827_v8 = vpop.f32.mrf.mxu3 }
 0x466   :  { %v828_v40 = vadd.f32 %v827_v8, %v1744_v20 }
 0x468   :  { %v856_v3 = vmax.f32 %v828_v40, 0.0 }
 0x46a   :  { %v861_v10 = vpack.c.bf16 %v856_v3, %v855_v41 }
 0x46c   :  { %881 = vmatmul.bf16.gmra.mxu0 %v861_v10 }
 0x46d   :  { %v830_v13 = vpop.f32.mrf.mxu3 }
 0x46e   :  { %v831_v21 = vadd.f32 %v830_v13, %v1756_v48 }
 0x470   :  { %v857_v7 = vmax.f32 %v831_v21, 0.0 }
 0x475   :  { %v832_v23 = vpop.f32.mrf.mxu3 }
 0x476   :  { %v833_v44 = vadd.f32 %v832_v23, %v1758_v51 }
 0x478   :  { %v858_v46 = vmax.f32 %v833_v44, 0.0 }
 0x47a   :  { %v862_v24 = vpack.c.bf16 %v858_v46, %v857_v7 }
 0x47c   :  { %886 = vmatmul.bf16.gmra.mxu0 %v862_v24 }
 0x4c9   :  { %v872_v36 = vpop.f32.mrf.mxu0 }
 0x4ca   :  { %v873_v39 = vadd.f32 %v1797_v12, %v872_v36 }
 0x4cc   :  { %v908_v53 = vmax.f32 %v873_v39, 0.0 }
 0x4d1   :  { %v874_v45 = vpop.f32.mrf.mxu0 }
 0x4d2   :  { %v875_v54 = vadd.f32 %v1797_v12, %v874_v45 }
 0x4d4   :  { %v909_v58 = vmax.f32 %v875_v54, 0.0 }
 0x4d6   :  { %v916_v9 = vpack.c.bf16 %v909_v58, %v908_v53 }
 0x4d8   :  { %928 = vmatmul.bf16.vlgmr.msrb.gmra.mxu1 %v916_v9 }
 0x4d9   :  { %v877_v61 = vpop.f32.mrf.mxu0 }
 0x4da   :  { %v878_v15 = vadd.f32 %v1797_v12, %v877_v61 }
 0x4dc   :  { %v910_v11 = vmax.f32 %v878_v15, 0.0 }
 0x4e1   :  { %v879_v16 = vpop.f32.mrf.mxu0 }
 0x4e2   :  { %v880_v22 = vadd.f32 %v1797_v12, %v879_v16 }
 0x4e4   :  { %v911_v43 = vmax.f32 %v880_v22, 0.0 }
 0x4e6   :  { %v917_v14 = vpack.c.bf16 %v911_v43, %v910_v11 }
 0x4e8   :  { %933 = vmatmul.bf16.gmra.mxu1 %v917_v14 }
 0x4e9   :  { %v882_v63 = vpop.f32.mrf.mxu0 }
 0x4ea   :  { %v883_v25 = vadd.f32 %v1797_v12, %v882_v63 }
 0x4ec   :  { %v912_v30 = vmax.f32 %v883_v25, 0.0 }
 0x4f1   :  { %v884_v0 = vpop.f32.mrf.mxu0 }
 0x4f2   :  { %v885_v1 = vadd.f32 %v1797_v12, %v884_v0 }
 0x4f4   :  { %v913_v26 = vmax.f32 %v885_v1, 0.0 }
 0x4f6   :  { %v918_v17 = vpack.c.bf16 %v913_v26, %v912_v30 }
 0x4f8   :  { %938 = vmatmul.bf16.gmra.mxu1 %v918_v17 }
 0x4f9   :  { %v887_v5 = vpop.f32.mrf.mxu0 }
 0x4fa   :  { %v888_v62 = vadd.f32 %v1797_v12, %v887_v5 }
 0x4fc   :  { %v914_v52 = vmax.f32 %v888_v62, 0.0 }
 0x501   :  { %v889_v6 = vpop.f32.mrf.mxu0 }
 0x502   :  { %v890_v27 = vadd.f32 %v1797_v12, %v889_v6 }
 0x504   :  { %v915_v8 = vmax.f32 %v890_v27, 0.0 }
 0x506   :  { %v919_v40 = vpack.c.bf16 %v915_v8, %v914_v52 }
 0x508   :  { %943 = vmatmul.bf16.gmra.mxu1 %v919_v40 }
 0x555   :  { %v929_v41 = vpop.f32.mrf.mxu1 }
 0x556   :  { %v930_v3 = vadd.f32 %v1822_v47, %v929_v41 }
 0x558   :  { %v949_v10 = vmul.f32 0.33333334, %v930_v3  ;;  %v965_v44 = vadd.f32 %v930_v3, %v1649_v28 }
 0x55a   :  { %v1962_v13 = vadd.f32 %v949_v10, %v1899_v42 }
 0x55d   :  { %v931_v21 = vpop.f32.mrf.mxu1 }
 0x55e   :  { %v932_v23 = vadd.f32 %v1822_v47, %v931_v21 }
 0x560   :  { %v950_v7 = vmul.f32 0.33333334, %v932_v23  ;;  %v966_v46 = vadd.f32 %v932_v23, %v1651_v29 }
 0x562   :  { %v1968_v24 = vadd.f32 %v950_v7, %v1905_v33  ;;  %v973_v36 = vpack.c.bf16 %v966_v46, %v965_v44 }
 0x564   :  { %985 = vmatmul.bf16.vlgmr.msra.gmra.mxu2 %v973_v36 }
 0x565   :  { %v934_v39 = vpop.f32.mrf.mxu1 }
 0x566   :  { %v935_v45 = vadd.f32 %v1822_v47, %v934_v39 }
 0x568   :  { %v951_v54 = vmul.f32 0.33333334, %v935_v45  ;;  %v967_v28 = vadd.f32 %v935_v45, %v1657_v31 }
 0x56a   :  { %v1972_v42 = vadd.f32 %v951_v54, %v1911_v60 }
 0x56d   :  { %v936_v53 = vpop.f32.mrf.mxu1 }
 0x56e   :  { %v937_v58 = vadd.f32 %v1822_v47, %v936_v53 }
 0x570   :  { %v952_v9 = vmul.f32 0.33333334, %v937_v58  ;;  %v968_v29 = vadd.f32 %v937_v58, %v1659_v32 }
 0x572   :  { %v1978_v33 = vadd.f32 %v952_v9, %v1916_v19  ;;  %v974_v61 = vpack.c.bf16 %v968_v29, %v967_v28 }
 0x574   :  { %990 = vmatmul.bf16.gmra.mxu2 %v974_v61 }
 0x575   :  { %v939_v15 = vpop.f32.mrf.mxu1 }
 0x576   :  { %v940_v16 = vadd.f32 %v1822_v47, %v939_v15 }
 0x578   :  { %v953_v22 = vmul.f32 0.33333334, %v940_v16  ;;  %v969_v31 = vadd.f32 %v940_v16, %v1663_v34 }
 0x57a   :  { %v1982_v60 = vadd.f32 %v953_v22, %v1923_v50 }
 0x57d   :  { %v941_v11 = vpop.f32.mrf.mxu1 }
 0x57e   :  { %v942_v43 = vadd.f32 %v1822_v47, %v941_v11 }
 0x580   :  { %v954_v14 = vmul.f32 0.33333334, %v942_v43  ;;  %v970_v32 = vadd.f32 %v942_v43, %v1665_v35 }
 0x582   :  { %v1988_v19 = vadd.f32 %v954_v14, %v1928_v55  ;;  %v975_v63 = vpack.c.bf16 %v970_v32, %v969_v31 }
 0x584   :  { %995 = vmatmul.bf16.gmra.mxu2 %v975_v63 }
 0x585   :  { %v944_v25 = vpop.f32.mrf.mxu1 }
 0x586   :  { %v945_v0 = vadd.f32 %v1822_v47, %v944_v25 }
 0x588   :  { %v955_v1 = vmul.f32 0.33333334, %v945_v0  ;;  %v971_v34 = vadd.f32 %v945_v0, %v1669_v37 }
 0x58a   :  { %v1992_v50 = vadd.f32 %v955_v1, %v1935_v49 }
 0x58d   :  { %v946_v30 = vpop.f32.mrf.mxu1 }
 0x58e   :  { %v947_v26 = vadd.f32 %v1822_v47, %v946_v30 }
 0x590   :  { %v956_v17 = vmul.f32 0.33333334, %v947_v26  ;;  %v972_v35 = vadd.f32 %v947_v26, %v1671_v38 }
 0x592   :  { %v1998_v55 = vadd.f32 %v956_v17, %v1940_v59  ;;  %v976_v5 = vpack.c.bf16 %v972_v35, %v971_v34 }
 0x594   :  { %1000 = vmatmul.bf16.gmra.mxu2 %v976_v5 }
 0x5e7   :  { %v986_v62 = vpop.f32.mrf.mxu2 }
 0x5e8   :  { %v987_v6 = vadd.f32 %v986_v62, %v1718_v56 }
 0x5ea   :  { %v1022_v52 = vmax.f32 %v987_v6, 0.0 }
 0x5ef   :  { %v988_v27 = vpop.f32.mrf.mxu2 }
 0x5f0   :  { %v989_v49 = vadd.f32 %v988_v27, %v1720_v57 }
 0x5f2   :  { %v1023_v8 = vmax.f32 %v989_v49, 0.0 }
 0x5f4   :  { %v1030_v40 = vpack.c.bf16 %v1023_v8, %v1022_v52 }
 0x5f6   :  { %1042 = vmatmul.bf16.vlgmr.msra.gmra.mxu3 %v1030_v40 }
 0x5f7   :  { %v991_v41 = vpop.f32.mrf.mxu2 }
 0x5f8   :  { %v992_v37 = vadd.f32 %v991_v41, %v1724_v2 }
 0x5fa   :  { %v1024_v59 = vmax.f32 %v992_v37, 0.0 }
 0x5ff   :  { %v993_v3 = vpop.f32.mrf.mxu2 }
 0x600   :  { %v994_v38 = vadd.f32 %v993_v3, %v1726_v4 }
 0x602   :  { %v1025_v10 = vmax.f32 %v994_v38, 0.0 }
 0x604   :  { %v1031_v21 = vpack.c.bf16 %v1025_v10, %v1024_v59 }
 0x606   :  { %1047 = vmatmul.bf16.gmra.mxu3 %v1031_v21 }
 0x607   :  { %v996_v23 = vpop.f32.mrf.mxu2 }
 0x608   :  { %v997_v56 = vadd.f32 %v996_v23, %v1737_v18 }
 0x60a   :  { %v1026_v7 = vmax.f32 %v997_v56, 0.0 }
 0x60f   :  { %v998_v44 = vpop.f32.mrf.mxu2 }
 0x610   :  { %v999_v57 = vadd.f32 %v998_v44, %v1744_v20 }
 0x612   :  { %v1027_v46 = vmax.f32 %v999_v57, 0.0 }
 0x614   :  { %v1032_v36 = vpack.c.bf16 %v1027_v46, %v1026_v7 }
 0x616   :  { %1052 = vmatmul.bf16.gmra.mxu3 %v1032_v36 }
 0x617   :  { %v1001_v39 = vpop.f32.mrf.mxu2 }
 0x618   :  { %v1002_v2 = vadd.f32 %v1001_v39, %v1756_v48 }
 0x61a   :  { %v1028_v54 = vmax.f32 %v1002_v2, 0.0 }
 0x61f   :  { %v1003_v45 = vpop.f32.mrf.mxu2 }
 0x620   :  { %v1004_v4 = vadd.f32 %v1003_v45, %v1758_v51 }
 0x622   :  { %v1029_v53 = vmax.f32 %v1004_v4, 0.0 }
 0x624   :  { %v1033_v58 = vpack.c.bf16 %v1029_v53, %v1028_v54 }
 0x626   :  { %1057 = vmatmul.bf16.gmra.mxu3 %v1033_v58 }
 0x679   :  { %v1043_v28 = vpop.f32.mrf.mxu3 }
 0x67a   :  { %v1044_v18 = vadd.f32 %v1797_v12, %v1043_v28 }
 0x67c   :  { %v1079_v29 = vmax.f32 %v1044_v18, 0.0 }
 0x681   :  { %v1045_v9 = vpop.f32.mrf.mxu3 }
 0x682   :  { %v1046_v20 = vadd.f32 %v1797_v12, %v1045_v9 }
 0x684   :  { %v1080_v61 = vmax.f32 %v1046_v20, 0.0 }
 0x686   :  { %v1087_v15 = vpack.c.bf16 %v1080_v61, %v1079_v29 }
 0x688   :  { %1099 = vmatmul.bf16.vlgmr.msrb.gmra.mxu0 %v1087_v15 }
 0x689   :  { %v1048_v16 = vpop.f32.mrf.mxu3 }
 0x68a   :  { %v1049_v48 = vadd.f32 %v1797_v12, %v1048_v16 }
 0x68c   :  { %v1081_v11 = vmax.f32 %v1049_v48, 0.0 }
 0x691   :  { %v1050_v22 = vpop.f32.mrf.mxu3 }
 0x692   :  { %v1051_v51 = vadd.f32 %v1797_v12, %v1050_v22 }
 0x694   :  { %v1082_v43 = vmax.f32 %v1051_v51, 0.0 }
 0x696   :  { %v1088_v31 = vpack.c.bf16 %v1082_v43, %v1081_v11 }
 0x698   :  { %1104 = vmatmul.bf16.gmra.mxu0 %v1088_v31 }
 0x699   :  { %v1053_v14 = vpop.f32.mrf.mxu3 }
 0x69a   :  { %v1054_v32 = vadd.f32 %v1797_v12, %v1053_v14 }
 0x69c   :  { %v1083_v0 = vmax.f32 %v1054_v32, 0.0 }
 0x6a1   :  { %v1055_v63 = vpop.f32.mrf.mxu3 }
 0x6a2   :  { %v1056_v25 = vadd.f32 %v1797_v12, %v1055_v63 }
 0x6a4   :  { %v1084_v1 = vmax.f32 %v1056_v25, 0.0 }
 0x6a6   :  { %v1089_v30 = vpack.c.bf16 %v1084_v1, %v1083_v0 }
 0x6a8   :  { %1109 = vmatmul.bf16.gmra.mxu0 %v1089_v30 }
 0x6a9   :  { %v1058_v26 = vpop.f32.mrf.mxu3 }
 0x6aa   :  { %v1059_v34 = vadd.f32 %v1797_v12, %v1058_v26 }
 0x6ac   :  { %v1085_v5 = vmax.f32 %v1059_v34, 0.0 }
 0x6b1   :  { %v1060_v17 = vpop.f32.mrf.mxu3 }
 0x6b2   :  { %v1061_v35 = vadd.f32 %v1797_v12, %v1060_v17 }
 0x6b4   :  { %v1086_v62 = vmax.f32 %v1061_v35, 0.0 }
 0x6b6   :  { %v1090_v6 = vpack.c.bf16 %v1086_v62, %v1085_v5 }
 0x6b8   :  { %1114 = vmatmul.bf16.vlgmr.msrb.gmra.mxu2 %v1090_v6 }
 0x705   :  { %v1100_v27 = vpop.f32.mrf.mxu0 }
 0x706   :  { %v1101_v49 = vadd.f32 %v1822_v47, %v1100_v27 }
 0x708   :  { %v1120_v52 = vmul.f32 0.16666667, %v1101_v49 }
 0x70a   :  { %v1128_v8 = vadd.f32 %v1120_v52, %v1962_v13 }
 0x70c   :  { %1136 = vst [vmem:[#allocation13] sm:$0xff] %v1128_v8 }
 0x70d   :  { %v1102_v40 = vpop.f32.mrf.mxu0 }
 0x70e   :  { %v1103_v41 = vadd.f32 %v1822_v47, %v1102_v40 }
 0x710   :  { %v1121_v37 = vmul.f32 0.16666667, %v1103_v41 }
 0x712   :  { %v1129_v3 = vadd.f32 %v1121_v37, %v1968_v24 }
 0x714   :  { %1137 = vst [vmem:[#allocation13 + $0x8] sm:$0xff] %v1129_v3 }
 0x715   :  { %v1105_v38 = vpop.f32.mrf.mxu0 }
 0x716   :  { %v1106_v12 = vadd.f32 %v1822_v47, %v1105_v38 }
 0x718   :  { %v1122_v59 = vmul.f32 0.16666667, %v1106_v12 }
 0x71a   :  { %v1130_v10 = vadd.f32 %v1122_v59, %v1972_v42 }
 0x71c   :  { %1138 = vst [vmem:[#allocation13 + $0x10] sm:$0xff] %v1130_v10 }
 0x71d   :  { %v1107_v21 = vpop.f32.mrf.mxu0 }
 0x71e   :  { %v1108_v23 = vadd.f32 %v1822_v47, %v1107_v21 }
 0x720   :  { %v1123_v56 = vmul.f32 0.16666667, %v1108_v23 }
 0x722   :  { %v1131_v13 = vadd.f32 %v1123_v56, %v1978_v33 }
 0x724   :  { %1139 = vst [vmem:[#allocation13 + $0x18] sm:$0xff] %v1131_v13 }
 0x725   :  { %v1110_v44 = vpop.f32.mrf.mxu0 }
 0x726   :  { %v1111_v57 = vadd.f32 %v1822_v47, %v1110_v44 }
 0x728   :  { %v1124_v7 = vmul.f32 0.16666667, %v1111_v57 }
 0x72a   :  { %v1132_v24 = vadd.f32 %v1124_v7, %v1982_v60 }
 0x72c   :  { %1140 = vst [vmem:[#allocation13 + $0x20] sm:$0xff] %v1132_v24 }
 0x72d   :  { %v1112_v46 = vpop.f32.mrf.mxu0 }
 0x72e   :  { %v1113_v36 = vadd.f32 %v1822_v47, %v1112_v46 }
 0x730   :  { %v1125_v39 = vmul.f32 0.16666667, %v1113_v36 }
 0x732   :  { %v1133_v42 = vadd.f32 %v1125_v39, %v1988_v19 }
 0x734   :  { %1141 = vst [vmem:[#allocation13 + $0x28] sm:$0xff] %v1133_v42 }
 0x73b   :  { %v1115_v2 = vpop.f32.mrf.mxu2 }
 0x73c   :  { %v1116_v45 = vadd.f32 %v1822_v47, %v1115_v2 }
 0x73e   :  { %v1126_v4 = vmul.f32 0.16666667, %v1116_v45 }
 0x740   :  { %v1134_v33 = vadd.f32 %v1126_v4, %v1992_v50 }
 0x742   :  { %1142 = vst [vmem:[#allocation13 + $0x30] sm:$0xff] %v1134_v33 }
 0x743   :  { %v1117_v54 = vpop.f32.mrf.mxu2 }
 0x744   :  { %v1118_v53 = vadd.f32 %v1822_v47, %v1117_v54 }
 0x746   :  { %v1127_v60 = vmul.f32 0.16666667, %v1118_v53 }
 0x748   :  { %v1135_v19 = vadd.f32 %v1127_v60, %v1998_v55 }
 0x74a   :  { %1143 = vst [vmem:[#allocation13 + $0x38] sm:$0xff] %v1135_v19 }
 0x74b   :  { %1156 = dma.vmem_to_hbm [thread:$0]  %s1149_s22, 1024, %s1151_s24, [#allocation4], %s1535_s14, %s1535_s14, %s1536_s15  }
 0x74c   :  { %1532 = dma.done.wait [#allocation4], 1024  }
 0x74d   :  { %1533 = vsyncadd [#allocation4], 4294966272 }
 0x74e   :  { %1161 = vsyncpa [#allocation3], 1 }
 0x74f   :  { %1162 = vsyncpa [#allocation6], 1 }
 0x750   :  { %1163 = vsyncpa [#allocation9], 1 }
 0x751   :  { %1164 = vsyncpa [#allocation12], 1 }
 0x752   :  { %1165 = vsyncpa [#allocation4], 1 }

</bundles_post_ra>
